<compile_context>
chip_gen: v5e
topology: v5e:2x2
jax: 0.10.0
libtpu: 0.0.40
codegen_flags: <defaults>
</compile_context>

<pallas_src>
import jax
import jax.numpy as jnp
from jax.experimental import pallas as pl
from jax.experimental.pallas import tpu as pltpu


def _round_up(x, m):
    return (x + m - 1) // m * m


# ----------------------------------------------------------------------------
# Pallas kernel (factory over the number of hidden layers / fields).
# ----------------------------------------------------------------------------
def make_wd_kernel(num_hidden, num_fields, latent_dim, vocab):
    def kernel(*refs):
        idx_ref = refs[0]                          # [F, TB]   int32 flat indices
        emb_t_ref = refs[1]                        # [K, V]    embedding table (transposed)
        lin_ref = refs[2]                          # [V, 1]    linear-weight table
        layer_refs = refs[3:3 + 2 * num_hidden]    # (W_i^T [out,in], b_i [out,1]) pairs
        w_out_ref = refs[3 + 2 * num_hidden]       # [H_last, 1]  last Linear column
        bias_ref = refs[4 + 2 * num_hidden]        # SMEM [1,1]   fused scalar bias
        out_ref = refs[5 + 2 * num_hidden]         # [1, TB]   lane-dense output row

        tb = out_ref.shape[-1]
        idx = idx_ref[...]                         # [F, TB]
        emb_t = emb_t_ref[...]                     # [K, V]
        lin_col = lin_ref[...]                     # [V, 1]

        # One-hot gather, batch-in-lanes. MXU does the embedding gather; the
        # wide part is an exact VPU multiply + sublane (XLU) reduce.
        iota_v = jax.lax.broadcasted_iota(jnp.int32, (vocab, tb), 0)
        wide = jnp.zeros((1, tb), jnp.float32)
        parts = []
        for f in range(num_fields):
            oh = (iota_v == idx[f:f + 1, :]).astype(jnp.float32)          # [V, TB]
            parts.append(jnp.dot(emb_t, oh,
                                 preferred_element_type=jnp.float32))     # [K, TB]
            wide = wide + jnp.sum(oh * lin_col, axis=0, keepdims=True)    # [1, TB]

        # Deep part: (Linear -> ReLU) x num_hidden, transposed layout so the
        # batch (TB) is the MXU N dimension everywhere.
        h = jnp.concatenate(parts, axis=0)                                # [F*K, TB]
        for li in range(num_hidden):
            w_t = layer_refs[2 * li][...]                                 # [out, in]
            b_c = layer_refs[2 * li + 1][...]                             # [out, 1]
            h = jnp.dot(w_t, h, preferred_element_type=jnp.float32) + b_c
            h = jnp.maximum(h, 0.0)

        # Final Linear(H_last -> 1) as multiply + sublane reduce (no N=1 matmul).
        deep = jnp.sum(h * w_out_ref[...], axis=0, keepdims=True)         # [1, TB]

        # Combine with the fused scalar bias (lin_bias + b_out + model_bias).
        out_ref[...] = (wide + deep + bias_ref[0, 0]).astype(out_ref.dtype)

    return kernel


# ----------------------------------------------------------------------------
# pallas_call wrapper: batch grid over lanes, resident tables/weights, SMEM bias.
# ----------------------------------------------------------------------------
def wd_pallas(flat_idx_t, emb_t, lin_col, hidden_layers_t, w_out_col, fused_bias,
              *, tile_b=2048, lane_align=256):
    num_fields, batch = flat_idx_t.shape
    latent_dim, vocab = emb_t.shape
    num_hidden = len(hidden_layers_t)

    # Batch tile lives on the lane axis: multiple of 256 (fills MXU N columns on
    # v6e/v7x, still a multiple of 128 for v5e), capped at the rounded-up batch.
    tile_b = max(lane_align, _round_up(int(tile_b), lane_align))
    tile_b = min(tile_b, _round_up(batch, lane_align))
    b_pad = _round_up(batch, tile_b)
    if b_pad != batch:
        # Only the tiny int32 index stream is padded (index 0 = valid row);
        # the padded output columns are sliced off below.
        flat_idx_t = jnp.pad(flat_idx_t, ((0, 0), (0, b_pad - batch)))
    num_tiles = b_pad // tile_b   # on v7x keep >= 2 so both TensorCores get work

    in_specs = [
        pl.BlockSpec((num_fields, tile_b), lambda i: (0, i)),   # streamed indices
        pl.BlockSpec(emb_t.shape, lambda i: (0, 0)),            # VMEM-resident table
        pl.BlockSpec(lin_col.shape, lambda i: (0, 0)),          # VMEM-resident table
    ]
    args = [flat_idx_t, emb_t, lin_col]
    for w_t, b_c in hidden_layers_t:                            # resident weights
        in_specs.append(pl.BlockSpec(w_t.shape, lambda i: (0, 0)))
        in_specs.append(pl.BlockSpec(b_c.shape, lambda i: (0, 0)))
        args.extend([w_t, b_c])
    in_specs.append(pl.BlockSpec(w_out_col.shape, lambda i: (0, 0)))
    args.append(w_out_col)
    # Fused scalar bias lives in SMEM (no padded VMEM tile).
    in_specs.append(pl.BlockSpec(memory_space=pltpu.MemorySpace.SMEM))
    args.append(fused_bias)

    out = pl.pallas_call(
        make_wd_kernel(num_hidden, num_fields, latent_dim, vocab),
        out_shape=jax.ShapeDtypeStruct((1, b_pad), jnp.float32),   # lane-dense row
        grid=(num_tiles,),
        in_specs=in_specs,
        out_specs=pl.BlockSpec((1, tile_b), lambda i: (0, i)),
        compiler_params=pltpu.CompilerParams(
            dimension_semantics=("parallel",)),                    # megacore sharding
    )(*args)

    return out[:, :batch]                                          # [1, B]


# ----------------------------------------------------------------------------
# Model: parameter init + thin JAX glue (layout plumbing only) + kernel call.
# ----------------------------------------------------------------------------
def init_params(key, field_dims, latent_dim, hidden_fractors, dtype=jnp.float32):
    total_vocab = int(sum(field_dims))
    num_fields = len(field_dims)
    d0 = num_fields * latent_dim  # InputLayer output_dim (AGGREGATE = "concat")

    hidden_dims = []
    cur = d0
    for f in hidden_fractors:
        hidden_dims.append(int(cur * f))
        cur = hidden_dims[-1]

    ks = jax.random.split(key, 6 + 2 * len(hidden_dims))
    scale = 0.05
    params = {
        # SparseFeatureLinear
        "lin_table": scale * jax.random.normal(ks[0], (total_vocab, 1), dtype),
        "lin_bias": scale * jax.random.normal(ks[1], (1, 1), dtype),
        # InputLayer embeddings
        "emb_table": scale * jax.random.normal(ks[2], (total_vocab, latent_dim), dtype),
        # WideAndDeepModel.bias
        "model_bias": scale * jax.random.normal(ks[3], (1, 1), dtype),
    }
    layers = []
    prev = d0
    for li, h in enumerate(hidden_dims):
        layers.append((scale * jax.random.normal(ks[4 + 2 * li], (prev, h), dtype),
                       scale * jax.random.normal(ks[5 + 2 * li], (1, h), dtype)))
        prev = h
    params["mlp_hidden"] = layers
    params["w_out"] = scale * jax.random.normal(ks[4 + 2 * len(hidden_dims)], (prev, 1), dtype)
    params["b_out"] = scale * jax.random.normal(ks[5 + 2 * len(hidden_dims)], (1, 1), dtype)

    offs = [0]
    for d in field_dims[:-1]:
        offs.append(offs[-1] + int(d))
    offsets = jnp.asarray(offs, jnp.int32)
    return params, offsets


def wide_and_deep_forward(x_idx, params, offsets, latent_dim, *, tile_b=2048):
    """x_idx: [B, F] int32 categorical indices (one value per field)."""
    batch, num_fields = x_idx.shape
    flat_idx_t = (x_idx.astype(jnp.int32) + offsets[None, :]).T           # [F, B]
    # Layout plumbing only (tiny, once per call; store pre-transposed in prod).
    emb_t = params["emb_table"].T.astype(jnp.float32)                     # [K, V]
    lin_col = params["lin_table"].astype(jnp.float32)                     # [V, 1]
    hidden_t = [(w.T.astype(jnp.float32), b.reshape(-1, 1).astype(jnp.float32))
                for (w, b) in params["mlp_hidden"]]
    w_out_col = params["w_out"].astype(jnp.float32)                       # [H_last, 1]
    fused_bias = (params["lin_bias"] + params["b_out"]
                  + params["model_bias"]).astype(jnp.float32)             # (1,1)
    out_row = wd_pallas(flat_idx_t, emb_t, lin_col, hidden_t, w_out_col,
                        fused_bias, tile_b=tile_b)                        # [1, B]
    return out_row.reshape(batch, 1)


def wide_and_deep_reference(x_idx, params, offsets, latent_dim):
    batch, num_fields = x_idx.shape
    flat_idx = x_idx + offsets[None, :]
    wide = jnp.sum(params["lin_table"][flat_idx, 0], axis=1, keepdims=True) \
        + params["lin_bias"]
    h = params["emb_table"][flat_idx].reshape(batch, num_fields * latent_dim)
    for w, b in params["mlp_hidden"]:
        h = jnp.maximum(h @ w + b, 0.0)
    deep = h @ params["w_out"] + params["b_out"]
    return wide + deep + params["model_bias"]


if __name__ == "__main__":
    # Small deterministic config. batch is ragged w.r.t. tile_b so the demo
    # exercises the multi-tile grid, the index-only padding and the final slice.
    field_dims = [10, 20, 30, 40]       # 4 sparse fields, total vocab = 100
    latent_dim = 8                      # cfg.WD.LATENT_DIM
    hidden_fractors = [1.0, 0.5]        # cfg.WD.HIDDEN_DIMS_FRACTOR -> [32, 16]
    batch = 600
    tile_b = 256                        # -> 3 grid steps (last one padded)

    key = jax.random.PRNGKey(0)
    kp, kx = jax.random.split(key)
    params, offsets = init_params(kp, field_dims, latent_dim, hidden_fractors)

    # Categorical indices, one per field.
    maxvals = jnp.asarray(field_dims, jnp.int32)
    x_idx = (jax.random.randint(kx, (batch, len(field_dims)), 0, 1 << 30)
             % maxvals[None, :]).astype(jnp.int32)

    out = wide_and_deep_forward(x_idx, params, offsets, latent_dim, tile_b=tile_b)
    out = jax.block_until_ready(out)

    ref = wide_and_deep_reference(x_idx, params, offsets, latent_dim)
    assert out.shape == (batch, 1), out.shape
    # 1e-3 tolerance covers MXU default-precision (bf16-input) f32 matmul
    # differences between the Mosaic kernel and the XLA reference.
    assert jnp.allclose(out, ref, atol=1e-3, rtol=1e-3), \
        float(jnp.max(jnp.abs(out - ref)))
    print("KERNEL_OK")
</pallas_src>

<mosaic_0001>
module attributes {stable_mosaic.version = 11 : i64} {
  func.func @kernel(%arg0: i32, %arg1: memref<4x256xi32, #tpu.memory_space<vmem>>, %arg2: memref<8x100xf32, #tpu.memory_space<vmem>>, %arg3: memref<100x1xf32, #tpu.memory_space<vmem>>, %arg4: memref<32x32xf32, #tpu.memory_space<vmem>>, %arg5: memref<32x1xf32, #tpu.memory_space<vmem>>, %arg6: memref<16x32xf32, #tpu.memory_space<vmem>>, %arg7: memref<16x1xf32, #tpu.memory_space<vmem>>, %arg8: memref<16x1xf32, #tpu.memory_space<vmem>>, %arg9: memref<1x1xf32, #tpu.memory_space<smem>>, %arg10: memref<1x256xf32, #tpu.memory_space<vmem>>) attributes {dimension_semantics = [#tpu.dimension_semantics<parallel>], iteration_bounds = array<i64: 3>, scalar_prefetch = 0 : i64, scratch_operands = 0 : i64, tpu.core_type = #tpu.core_type<tc>, window_params = [{transform_indices = @transform_0, window_bounds = array<i64: 4, 256>}, {pipeline_mode = #tpu.pipeline_mode<synchronous>, transform_indices = @transform_1, window_bounds = array<i64: 8, 100>}, {pipeline_mode = #tpu.pipeline_mode<synchronous>, transform_indices = @transform_2, window_bounds = array<i64: 100, 1>}, {pipeline_mode = #tpu.pipeline_mode<synchronous>, transform_indices = @transform_3, window_bounds = array<i64: 32, 32>}, {pipeline_mode = #tpu.pipeline_mode<synchronous>, transform_indices = @transform_4, window_bounds = array<i64: 32, 1>}, {pipeline_mode = #tpu.pipeline_mode<synchronous>, transform_indices = @transform_5, window_bounds = array<i64: 16, 32>}, {pipeline_mode = #tpu.pipeline_mode<synchronous>, transform_indices = @transform_6, window_bounds = array<i64: 16, 1>}, {pipeline_mode = #tpu.pipeline_mode<synchronous>, transform_indices = @transform_7, window_bounds = array<i64: 16, 1>}, {transform_indices = @transform_8, window_bounds = array<i64: 1, 1>}, {transform_indices = @transform_9, window_bounds = array<i64: 1, 256>}]} {
    %c0 = arith.constant 0 : index
    %c0_0 = arith.constant 0 : index
    %0 = vector.load %arg1[%c0, %c0_0] : memref<4x256xi32, #tpu.memory_space<vmem>>, vector<4x256xi32>
    %c0_1 = arith.constant 0 : index
    %c0_2 = arith.constant 0 : index
    %1 = vector.load %arg2[%c0_1, %c0_2] : memref<8x100xf32, #tpu.memory_space<vmem>>, vector<8x100xf32>
    %c0_3 = arith.constant 0 : index
    %c0_4 = arith.constant 0 : index
    %2 = vector.load %arg3[%c0_3, %c0_4] : memref<100x1xf32, #tpu.memory_space<vmem>>, vector<100x1xf32>
    %3 = tpu.iota {dimensions = array<i32: 0>} : vector<100x256xi32>
    %cst = arith.constant 0.000000e+00 : f32
    %4 = vector.broadcast %cst : f32 to vector<1x256xf32>
    %5 = vector.extract_strided_slice %0 {offsets = [0, 0], sizes = [1, 256], strides = [1, 1]} : vector<4x256xi32> to vector<1x256xi32>
    %6 = vector.broadcast %5 : vector<1x256xi32> to vector<100x256xi32>
    %7 = arith.cmpi eq, %3, %6 : vector<100x256xi32>
    %8 = arith.extui %7 : vector<100x256xi1> to vector<100x256xi32>
    %9 = arith.sitofp %8 : vector<100x256xi32> to vector<100x256xf32>
    %cst_5 = arith.constant dense<0.000000e+00> : vector<8x256xf32>
    %10 = tpu.matmul %1, %9, %cst_5 {dimension_numbers = #tpu.dot_dimension_numbers<[1], [0], [0], [1], [0, 0, 1, 1], [], []>} : vector<8x100xf32>, vector<100x256xf32>, vector<8x256xf32> -> vector<8x256xf32>
    %11 = vector.broadcast %2 : vector<100x1xf32> to vector<100x256xf32>
    %12 = arith.mulf %9, %11 : vector<100x256xf32>
    %cst_6 = arith.constant dense<0.000000e+00> : vector<256xf32>
    %13 = vector.multi_reduction <add>, %12, %cst_6 [0] : vector<100x256xf32> to vector<256xf32>
    %14 = vector.shape_cast %13 : vector<256xf32> to vector<1x256xf32>
    %15 = arith.addf %4, %14 : vector<1x256xf32>
    %16 = vector.extract_strided_slice %0 {offsets = [1, 0], sizes = [1, 256], strides = [1, 1]} : vector<4x256xi32> to vector<1x256xi32>
    %17 = vector.broadcast %16 : vector<1x256xi32> to vector<100x256xi32>
    %18 = arith.cmpi eq, %3, %17 : vector<100x256xi32>
    %19 = arith.extui %18 : vector<100x256xi1> to vector<100x256xi32>
    %20 = arith.sitofp %19 : vector<100x256xi32> to vector<100x256xf32>
    %cst_7 = arith.constant dense<0.000000e+00> : vector<8x256xf32>
    %21 = tpu.matmul %1, %20, %cst_7 {dimension_numbers = #tpu.dot_dimension_numbers<[1], [0], [0], [1], [0, 0, 1, 1], [], []>} : vector<8x100xf32>, vector<100x256xf32>, vector<8x256xf32> -> vector<8x256xf32>
    %22 = vector.broadcast %2 : vector<100x1xf32> to vector<100x256xf32>
    %23 = arith.mulf %20, %22 : vector<100x256xf32>
    %cst_8 = arith.constant dense<0.000000e+00> : vector<256xf32>
    %24 = vector.multi_reduction <add>, %23, %cst_8 [0] : vector<100x256xf32> to vector<256xf32>
    %25 = vector.shape_cast %24 : vector<256xf32> to vector<1x256xf32>
    %26 = arith.addf %15, %25 : vector<1x256xf32>
    %27 = vector.extract_strided_slice %0 {offsets = [2, 0], sizes = [1, 256], strides = [1, 1]} : vector<4x256xi32> to vector<1x256xi32>
    %28 = vector.broadcast %27 : vector<1x256xi32> to vector<100x256xi32>
    %29 = arith.cmpi eq, %3, %28 : vector<100x256xi32>
    %30 = arith.extui %29 : vector<100x256xi1> to vector<100x256xi32>
    %31 = arith.sitofp %30 : vector<100x256xi32> to vector<100x256xf32>
    %cst_9 = arith.constant dense<0.000000e+00> : vector<8x256xf32>
    %32 = tpu.matmul %1, %31, %cst_9 {dimension_numbers = #tpu.dot_dimension_numbers<[1], [0], [0], [1], [0, 0, 1, 1], [], []>} : vector<8x100xf32>, vector<100x256xf32>, vector<8x256xf32> -> vector<8x256xf32>
    %33 = vector.broadcast %2 : vector<100x1xf32> to vector<100x256xf32>
    %34 = arith.mulf %31, %33 : vector<100x256xf32>
    %cst_10 = arith.constant dense<0.000000e+00> : vector<256xf32>
    %35 = vector.multi_reduction <add>, %34, %cst_10 [0] : vector<100x256xf32> to vector<256xf32>
    %36 = vector.shape_cast %35 : vector<256xf32> to vector<1x256xf32>
    %37 = arith.addf %26, %36 : vector<1x256xf32>
    %38 = vector.extract_strided_slice %0 {offsets = [3, 0], sizes = [1, 256], strides = [1, 1]} : vector<4x256xi32> to vector<1x256xi32>
    %39 = vector.broadcast %38 : vector<1x256xi32> to vector<100x256xi32>
    %40 = arith.cmpi eq, %3, %39 : vector<100x256xi32>
    %41 = arith.extui %40 : vector<100x256xi1> to vector<100x256xi32>
    %42 = arith.sitofp %41 : vector<100x256xi32> to vector<100x256xf32>
    %cst_11 = arith.constant dense<0.000000e+00> : vector<8x256xf32>
    %43 = tpu.matmul %1, %42, %cst_11 {dimension_numbers = #tpu.dot_dimension_numbers<[1], [0], [0], [1], [0, 0, 1, 1], [], []>} : vector<8x100xf32>, vector<100x256xf32>, vector<8x256xf32> -> vector<8x256xf32>
    %44 = vector.broadcast %2 : vector<100x1xf32> to vector<100x256xf32>
    %45 = arith.mulf %42, %44 : vector<100x256xf32>
    %cst_12 = arith.constant dense<0.000000e+00> : vector<256xf32>
    %46 = vector.multi_reduction <add>, %45, %cst_12 [0] : vector<100x256xf32> to vector<256xf32>
    %47 = vector.shape_cast %46 : vector<256xf32> to vector<1x256xf32>
    %48 = arith.addf %37, %47 : vector<1x256xf32>
    %49 = tpu.concatenate %10, %21, %32, %43 in 0 : vector<8x256xf32>, vector<8x256xf32>, vector<8x256xf32>, vector<8x256xf32> -> vector<32x256xf32>
    %c0_13 = arith.constant 0 : index
    %c0_14 = arith.constant 0 : index
    %50 = vector.load %arg4[%c0_13, %c0_14] : memref<32x32xf32, #tpu.memory_space<vmem>>, vector<32x32xf32>
    %c0_15 = arith.constant 0 : index
    %c0_16 = arith.constant 0 : index
    %51 = vector.load %arg5[%c0_15, %c0_16] : memref<32x1xf32, #tpu.memory_space<vmem>>, vector<32x1xf32>
    %cst_17 = arith.constant dense<0.000000e+00> : vector<32x256xf32>
    %52 = tpu.matmul %50, %49, %cst_17 {dimension_numbers = #tpu.dot_dimension_numbers<[1], [0], [0], [1], [0, 0, 1, 1], [], []>} : vector<32x32xf32>, vector<32x256xf32>, vector<32x256xf32> -> vector<32x256xf32>
    %53 = vector.broadcast %51 : vector<32x1xf32> to vector<32x256xf32>
    %54 = arith.addf %52, %53 : vector<32x256xf32>
    %cst_18 = arith.constant 0.000000e+00 : f32
    %55 = vector.broadcast %cst_18 : f32 to vector<32x256xf32>
    %56 = arith.maximumf %54, %55 : vector<32x256xf32>
    %c0_19 = arith.constant 0 : index
    %c0_20 = arith.constant 0 : index
    %57 = vector.load %arg6[%c0_19, %c0_20] : memref<16x32xf32, #tpu.memory_space<vmem>>, vector<16x32xf32>
    %c0_21 = arith.constant 0 : index
    %c0_22 = arith.constant 0 : index
    %58 = vector.load %arg7[%c0_21, %c0_22] : memref<16x1xf32, #tpu.memory_space<vmem>>, vector<16x1xf32>
    %cst_23 = arith.constant dense<0.000000e+00> : vector<16x256xf32>
    %59 = tpu.matmul %57, %56, %cst_23 {dimension_numbers = #tpu.dot_dimension_numbers<[1], [0], [0], [1], [0, 0, 1, 1], [], []>} : vector<16x32xf32>, vector<32x256xf32>, vector<16x256xf32> -> vector<16x256xf32>
    %60 = vector.broadcast %58 : vector<16x1xf32> to vector<16x256xf32>
    %61 = arith.addf %59, %60 : vector<16x256xf32>
    %cst_24 = arith.constant 0.000000e+00 : f32
    %62 = vector.broadcast %cst_24 : f32 to vector<16x256xf32>
    %63 = arith.maximumf %61, %62 : vector<16x256xf32>
    %c0_25 = arith.constant 0 : index
    %c0_26 = arith.constant 0 : index
    %64 = vector.load %arg8[%c0_25, %c0_26] : memref<16x1xf32, #tpu.memory_space<vmem>>, vector<16x1xf32>
    %65 = vector.broadcast %64 : vector<16x1xf32> to vector<16x256xf32>
    %66 = arith.mulf %63, %65 : vector<16x256xf32>
    %cst_27 = arith.constant dense<0.000000e+00> : vector<256xf32>
    %67 = vector.multi_reduction <add>, %66, %cst_27 [0] : vector<16x256xf32> to vector<256xf32>
    %68 = vector.shape_cast %67 : vector<256xf32> to vector<1x256xf32>
    %69 = arith.addf %48, %68 : vector<1x256xf32>
    %c0_28 = arith.constant 0 : index
    %c0_29 = arith.constant 0 : index
    %70 = memref.load %arg9[%c0_28, %c0_29] : memref<1x1xf32, #tpu.memory_space<smem>>
    %71 = vector.broadcast %70 : f32 to vector<1x256xf32>
    %72 = arith.addf %69, %71 : vector<1x256xf32>
    %c0_30 = arith.constant 0 : index
    %c0_31 = arith.constant 0 : index
    %73 = vector.load %arg10[%c0_30, %c0_31] : memref<1x256xf32, #tpu.memory_space<vmem>>, vector<1x256xf32>
    tpu.vector_store %arg10[%c0_30, %c0_31], %72 {strides = array<i32>} : memref<1x256xf32, #tpu.memory_space<vmem>>, vector<1x256xf32>,
    return
  }
  func.func @transform_0(%arg0: i32) -> (i32, i32) {
    %c0_i32 = arith.constant 0 : i32
    %c0_i32_0 = arith.constant 0 : i32
    return %c0_i32, %arg0 : i32, i32
  }
  func.func @transform_1(%arg0: i32) -> (i32, i32) {
    %c0_i32 = arith.constant 0 : i32
    %c0_i32_0 = arith.constant 0 : i32
    %c0_i32_1 = arith.constant 0 : i32
    return %c0_i32, %c0_i32_0 : i32, i32
  }
  func.func @transform_2(%arg0: i32) -> (i32, i32) {
    %c0_i32 = arith.constant 0 : i32
    %c0_i32_0 = arith.constant 0 : i32
    %c0_i32_1 = arith.constant 0 : i32
    return %c0_i32, %c0_i32_0 : i32, i32
  }
  func.func @transform_3(%arg0: i32) -> (i32, i32) {
    %c0_i32 = arith.constant 0 : i32
    %c0_i32_0 = arith.constant 0 : i32
    %c0_i32_1 = arith.constant 0 : i32
    return %c0_i32, %c0_i32_0 : i32, i32
  }
  func.func @transform_4(%arg0: i32) -> (i32, i32) {
    %c0_i32 = arith.constant 0 : i32
    %c0_i32_0 = arith.constant 0 : i32
    %c0_i32_1 = arith.constant 0 : i32
    return %c0_i32, %c0_i32_0 : i32, i32
  }
  func.func @transform_5(%arg0: i32) -> (i32, i32) {
    %c0_i32 = arith.constant 0 : i32
    %c0_i32_0 = arith.constant 0 : i32
    %c0_i32_1 = arith.constant 0 : i32
    return %c0_i32, %c0_i32_0 : i32, i32
  }
  func.func @transform_6(%arg0: i32) -> (i32, i32) {
    %c0_i32 = arith.constant 0 : i32
    %c0_i32_0 = arith.constant 0 : i32
    %c0_i32_1 = arith.constant 0 : i32
    return %c0_i32, %c0_i32_0 : i32, i32
  }
  func.func @transform_7(%arg0: i32) -> (i32, i32) {
    %c0_i32 = arith.constant 0 : i32
    %c0_i32_0 = arith.constant 0 : i32
    %c0_i32_1 = arith.constant 0 : i32
    return %c0_i32, %c0_i32_0 : i32, i32
  }
  func.func @transform_8(%arg0: i32) -> (i32, i32) {
    %c0_i32 = arith.constant 0 : i32
    %c0_i32_0 = arith.constant 0 : i32
    %c0_i32_1 = arith.constant 0 : i32
    return %c0_i32, %c0_i32_0 : i32, i32
  }
  func.func @transform_9(%arg0: i32) -> (i32, i32) {
    %c0_i32 = arith.constant 0 : i32
    %c0_i32_0 = arith.constant 0 : i32
    return %c0_i32, %arg0 : i32, i32
  }
}

</mosaic_0001>

<bundles_post_ra>
// kernel: tpu_custom_call.1
= control target key start
LH: loop header
LB: loop body
LE: loop exit
PB: predicated region body
PF: predicated region fallthrough
CT: control target
= control target key end

     0   :  { %s3391_s0 = inlined_call_operand.vmem [shape: s32[4,768], index: 0, kind: input, shape index: {}]   ;;  %s3392_s1 = inlined_call_operand.vmem [shape: f32[8,100], index: 1, kind: input, shape index: {}]   ;;  %s3393_s2 = inlined_call_operand.vmem [shape: f32[100,1], index: 2, kind: input, shape index: {}]   ;;  %s3394_s3 = inlined_call_operand.vmem [shape: f32[32,32], index: 3, kind: input, shape index: {}]   ;;  %s3395_s4 = inlined_call_operand.vmem [shape: f32[32,1], index: 4, kind: input, shape index: {}]   ;;  %s3396_s5 = inlined_call_operand.vmem [shape: f32[16,32], index: 5, kind: input, shape index: {}]   ;;  %s3397_s6 = inlined_call_operand.vmem [shape: f32[16,1], index: 6, kind: input, shape index: {}]   ;;  %s3398_s7 = inlined_call_operand.vmem [shape: f32[16,1], index: 7, kind: input, shape index: {}]   ;;  %s3399_s8 = inlined_call_operand.<no memory space> [shape: f32[1,1], index: 8, kind: input, shape index: {}]   ;;  %s3400_s9 = inlined_call_operand.hbm [shape: f32[1,768], index: 9, kind: output, shape index: {}]  }
   0x1   :  { %14 = sst [smem:[#allocation2]] %s3399_s8 }
   0x2   :  { %15 = vsyncpa [#allocation4], 0 }
   0x3   :  { %17 = vsyncpa [#allocation4 + $0x1], 0  ;;  %s1921_s11 = smov 0   ;;  %s1923_s12 = smov 0  }
   0x4   :  { %s1925_s13 = smov 0   ;;  %s1927_s14 = smov 0  }
   0x5 LB: > { %s1508_s8 = sadd.s32 4294967295, %s1863_s14   ;;  %s1509_s15 = sadd.s32 4294967294, %s1863_s14   ;;  %s1863_s14 = sphi %s1927_s14, %s3543_s14   ;;  %s1859_s13 = sphi %s1925_s13, %s3542_s13   ;;  %s1855_s12 = sphi %s1923_s12, %s3541_s12   ;;  %s1851_s11 = sphi %s1921_s11, %s3540_s11  }
   0x6   : > { %s1944_s16 = sadd.s32 1, %s1863_s14   ;;  %s224_s17 = sadd.s32 1, %s1859_s13 }
   0x7   : > { %s221_s18 = ssub.s32 %s1863_s14, %s1944_s16  ;;  %p234_p0 = scmp.ne.s32.totalorder %s1859_s13, %s1855_s12 }
   0x8   : > { %p222_p1 = scmp.eq.s32.totalorder %s221_s18, 0  ;;  %p235_p2 = scmp.eq.s32.totalorder %s1508_s8, 2 }
   0x9   : > { %p240_p3 = scmp.ne.s32.totalorder %s1855_s12, %s1851_s11  ;;  %p241_p4 = scmp.eq.s32.totalorder %s1509_s15, 2 }
   0xa   : > { %s1954_s19 = scalar_select %p222_p1, %s1859_s13, %s224_s17  }
   0xb   : > { %p1956_p5 = por %p235_p2, %p234_p0  ;;  %p1960_p6 = por %p241_p4, %p240_p3 }
   0xc   : > { %p1512_p7 = scmp.ge.s32.totalorder %s1863_s14, 1  ;;  %p292_p8 = scmp.lt.s32.totalorder %s1863_s14, 4 }
   0xe   : > { %p293_p9 = pnand %p1512_p7, %p292_p8 }
  0x10   : > { %296 = sbr.rel (%p293_p9) target bundleno = 552 (0x228), region = 56 }
  0x15   : > { %s1966_s22 = sshll.u32 %s1508_s8, 1  ;;  %v3401_v0 = vlaneseq  ;;  %vm450_vm0 = vcmask 1043456   ;;  %v1865_v30 = vmov 0.0   ;;  %v3406_v39 = vmov 1.0   ;;  %s1419_s8 = sld [smem:[#allocation2]] }
  0x16   : > { %p329_p10 = scmp.lt.s32.totalorder %s1966_s22, 5  ;;  %s325_s15 = sand.u32 1, %s1855_s12  }
  0x17   : > { %v1970_v1 = vshrl.u32 %v3401_v0, 7  ;;  %s1513_s17 = sshll.u32 %s325_s15, 1  ;;  %s1435_s28 = scalar_lea.sflag [#allocation4], %s325_s15 }
  0x18   : > { %s330_s23 = scalar_select %p329_p10, %s1966_s22, 5 }
  0x19   : > { %v1974_v2 = vadd.s32 96, %v1970_v1  ;;  %v1977_v3 = vadd.s32 88, %v1970_v1  ;;  %v1980_v4 = vadd.s32 80, %v1970_v1  ;;  %v1986_v5 = vadd.s32 72, %v1970_v1  ;;  %s327_s25 = scalar_lea.vmem [#allocation3], %s1513_s17 }
  0x1a   : > { %s1515_s24 = sshll.u32 %s330_s23, 2  ;;  %v1989_v6 = vadd.s32 64, %v1970_v1  ;;  %v1992_v7 = vadd.s32 56, %v1970_v1  ;;  %v1995_v8 = vadd.s32 48, %v1970_v1  ;;  %v1998_v10 = vadd.s32 40, %v1970_v1  ;;  %s1447_s26 = sshll.u32 %s327_s25, 4  ;;  %s1448_s26 = int_to_ptr.vmem [resolvable:$true] %s1447_s26 }
  0x1b   : > { %s332_s27 = scalar_lea.vmem %s3391_s0, %s1515_s24  ;;  %v2001_v11 = vadd.s32 32, %v1970_v1  ;;  %v2004_v12 = vadd.s32 24, %v1970_v1  ;;  %v2007_v13 = vadd.s32 16, %v1970_v1  ;;  %v2010_v18 = vadd.s32 8, %v1970_v1  ;;  %s1445_s24 = scalar_lea.hbm %s3400_s9, %s1966_s22 }
  0x1c   : > { %v335_v9 = vld [vmem:[%s332_s27] sm:$0xff]  ;;  %s1449_s27 = sshll.u32 %s1445_s24, 4  ;;  %s1450_s27 = int_to_ptr.hbm [resolvable:$true] %s1449_s27 }
  0x1d   : > { %v628_v14 = vperm.slane %v335_v9, 1  ;;  %v629_v15 = vperm.slane %v335_v9, 5  ;;  %v364_v16 = vperm.slane %v335_v9, 0  ;;  %v365_v17 = vperm.slane %v335_v9, 4  ;;  %s1815_s22 = sshra.s32 %s1450_s27, 4  ;;  %s1816_s22 = int_to_ptr.hbm [resolvable:$true] %s1815_s22 }
  0x1e   : > { %v1016_v19 = vperm.slane %v335_v9, 3  ;;  %v1017_v20 = vperm.slane %v335_v9, 7  ;;  %v822_v21 = vperm.slane %v335_v9, 2  ;;  %v823_v25 = vperm.slane %v335_v9, 6  ;;  %s1817_s29 = scalar_lea.hbm %s1816_s22, 2  ;;  %p1822_p0 = scmp.lt.s32.totalorder %s1816_s22, %s3400_s9 }
  0x1f   : > { %v2012_v22 = vperm.slane %v628_v14, 1  ;;  %v2014_v23 = vperm.slane %v629_v15, 1  ;;  %v2016_v24 = vperm.slane %v364_v16, 0  ;;  %v2018_v26 = vperm.slane %v365_v17, 0  ;;  %p1818_p11 = scmp.ne.s32.totalorder %s1816_s22, %s1817_s29 }
  0x20   : > { %v2020_v27 = vperm.slane %v1016_v19, 3  ;;  %v2022_v28 = vperm.slane %v1017_v20, 3  ;;  %v2024_v29 = vperm.slane %v822_v21, 2  ;;  %v2062_v35 = vperm.slane %v823_v25, 2 }
  0x21   : > { %vm656_vm1 = vcmp.eq.s32.totalorder %v1974_v2, %v2012_v22  ;;  %vm657_vm2 = vcmp.eq.s32.totalorder %v1974_v2, %v2014_v23  ;;  %vm654_vm3 = vcmp.eq.s32.totalorder %v1977_v3, %v2012_v22  ;;  %vm655_vm4 = vcmp.eq.s32.totalorder %v1977_v3, %v2014_v23  ;;  %p1819_p12 = pnand %p1818_p11, %p1956_p5 }
  0x22   : > { %v2035_v31 = vsel %vm656_vm1, 1.0, %v1865_v30  ;;  %v2038_v32 = vsel %vm657_vm2, 1.0, %v1865_v30  ;;  %v2044_v33 = vsel %vm654_vm3, 1.0, %v1865_v30  ;;  %v2050_v34 = vsel %vm655_vm4, 1.0, %v1865_v30 }
  0x23   : > { %3418 = vst [vmem:[#allocation6_spill] sm:$0xff] %v2035_v31  ;;  %1596 = vmatpush.msk.msra.mxu2 %vm450_vm0, %v2035_v31  ;;  %1610 = vmatpush.msk.msra.mxu3 %vm450_vm0, %v2038_v32  ;;  %vm652_vm5 = vcmp.eq.s32.totalorder %v1980_v4, %v2012_v22  ;;  %vm653_vm6 = vcmp.eq.s32.totalorder %v1980_v4, %v2014_v23  ;;  %p1820_p13 = pneg %p1819_p12 }
  0x24   : > { %3419 = vst [vmem:[#allocation7_spill] sm:$0xff] %v2038_v32  ;;  %vm650_vm7 = vcmp.eq.s32.totalorder %v1986_v5, %v2012_v22  ;;  %v2068_v36 = vsel %vm652_vm5, 1.0, %v1865_v30  ;;  %v2074_v37 = vsel %vm653_vm6, 1.0, %v1865_v30  ;;  %vm651_vm8 = vcmp.eq.s32.totalorder %v1986_v5, %v2014_v23 }
  0x25   : > { %3420 = vst [vmem:[#allocation8_spill] sm:$0xff] %v2044_v33  ;;  %v2080_v38 = vsel %vm650_vm7, 1.0, %v1865_v30  ;;  %1597 = vmatpush.msk.msra.mxu2 %vm654_vm3, %v3406_v39  ;;  %1611 = vmatpush.msk.msra.mxu3 %vm655_vm4, %v3406_v39  ;;  %v2096_v40 = vsel %vm651_vm8, 1.0, %v1865_v30  ;;  %vm392_vm9 = vcmp.eq.s32.totalorder %v1974_v2, %v2016_v24  ;;  %vm393_vm10 = vcmp.eq.s32.totalorder %v1974_v2, %v2018_v26 }
  0x26   : > { %3421 = vst [vmem:[#allocation9_spill] sm:$0xff] %v2050_v34  ;;  %vm648_vm11 = vcmp.eq.s32.totalorder %v1989_v6, %v2012_v22  ;;  %v2105_v41 = vsel %vm392_vm9, 1.0, %v1865_v30  ;;  %v2108_v42 = vsel %vm393_vm10, 1.0, %v1865_v30  ;;  %vm649_vm12 = vcmp.eq.s32.totalorder %v1989_v6, %v2014_v23 }
  0x27   : > { %3422 = vst [vmem:[#allocation10_spill] sm:$0xff] %v2068_v36  ;;  %v2114_v43 = vsel %vm648_vm11, 1.0, %v1865_v30  ;;  %1598 = vmatpush.msk.msra.mxu2 %vm652_vm5, %v3406_v39  ;;  %1612 = vmatpush.msk.msra.mxu3 %vm653_vm6, %v3406_v39  ;;  %v2130_v44 = vsel %vm649_vm12, 1.0, %v1865_v30  ;;  %vm390_vm13 = vcmp.eq.s32.totalorder %v1977_v3, %v2016_v24  ;;  %vm391_vm14 = vcmp.eq.s32.totalorder %v1977_v3, %v2018_v26 }
  0x28   : > { %3423 = vst [vmem:[#allocation11_spill] sm:$0xff] %v2074_v37  ;;  %vm646_vm15 = vcmp.eq.s32.totalorder %v1992_v7, %v2012_v22  ;;  %1542 = vmatpush.msk.msra.mxu0 %vm450_vm0, %v2105_v41  ;;  %1556 = vmatpush.msk.msra.mxu1 %vm450_vm0, %v2108_v42  ;;  %v2143_v45 = vsel %vm390_vm13, 1.0, %v1865_v30  ;;  %v2146_v46 = vsel %vm391_vm14, 1.0, %v1865_v30  ;;  %vm647_vm1 = vcmp.eq.s32.totalorder %v1992_v7, %v2014_v23 }
  0x29   : > { %3424 = vst [vmem:[#allocation12_spill] sm:$0xff] %v2080_v38  ;;  %v2152_v47 = vsel %vm646_vm15, 1.0, %v1865_v30  ;;  %1599 = vmatpush.msk.msra.mxu2 %vm650_vm7, %v3406_v39  ;;  %1613 = vmatpush.msk.msra.mxu3 %vm651_vm8, %v3406_v39  ;;  %v2168_v48 = vsel %vm647_vm1, 1.0, %v1865_v30  ;;  %vm388_vm2 = vcmp.eq.s32.totalorder %v1980_v4, %v2016_v24  ;;  %vm389_vm3 = vcmp.eq.s32.totalorder %v1980_v4, %v2018_v26 }
  0x2a   : > { %3425 = vst [vmem:[#allocation13_spill] sm:$0xff] %v2096_v40  ;;  %vm644_vm4 = vcmp.eq.s32.totalorder %v1995_v8, %v2012_v22  ;;  %1543 = vmatpush.msk.msra.mxu0 %vm390_vm13, %v3406_v39  ;;  %1557 = vmatpush.msk.msra.mxu1 %vm391_vm14, %v3406_v39  ;;  %v2179_v49 = vsel %vm388_vm2, 1.0, %v1865_v30  ;;  %v2182_v50 = vsel %vm389_vm3, 1.0, %v1865_v30  ;;  %vm645_vm5 = vcmp.eq.s32.totalorder %v1995_v8, %v2014_v23 }
  0x2b   : > { %3426 = vst [vmem:[#allocation14_spill] sm:$0xff] %v2105_v41  ;;  %v2188_v51 = vsel %vm644_vm4, 1.0, %v1865_v30  ;;  %1600 = vmatpush.msk.msra.mxu2 %vm648_vm11, %v3406_v39  ;;  %1614 = vmatpush.msk.msra.mxu3 %vm649_vm12, %v3406_v39  ;;  %v2204_v52 = vsel %vm645_vm5, 1.0, %v1865_v30  ;;  %vm386_vm6 = vcmp.eq.s32.totalorder %v1986_v5, %v2016_v24  ;;  %vm387_vm7 = vcmp.eq.s32.totalorder %v1986_v5, %v2018_v26 }
  0x2c   : > { %3427 = vst [vmem:[#allocation15_spill] sm:$0xff] %v2108_v42  ;;  %vm642_vm8 = vcmp.eq.s32.totalorder %v1998_v10, %v2012_v22  ;;  %1544 = vmatpush.msk.msra.mxu0 %vm388_vm2, %v3406_v39  ;;  %1558 = vmatpush.msk.msra.mxu1 %vm389_vm3, %v3406_v39  ;;  %v2215_v53 = vsel %vm386_vm6, 1.0, %v1865_v30  ;;  %v2218_v54 = vsel %vm387_vm7, 1.0, %v1865_v30  ;;  %vm643_vm9 = vcmp.eq.s32.totalorder %v1998_v10, %v2014_v23 }
  0x2d   : > { %3428 = vst [vmem:[#allocation16_spill] sm:$0xff] %v2114_v43  ;;  %v2224_v55 = vsel %vm642_vm8, 1.0, %v1865_v30  ;;  %1601 = vmatpush.msk.msra.mxu2 %vm646_vm15, %v3406_v39  ;;  %1615 = vmatpush.msk.msra.mxu3 %vm647_vm1, %v3406_v39  ;;  %v2240_v56 = vsel %vm643_vm9, 1.0, %v1865_v30  ;;  %vm384_vm10 = vcmp.eq.s32.totalorder %v1989_v6, %v2016_v24  ;;  %vm385_vm11 = vcmp.eq.s32.totalorder %v1989_v6, %v2018_v26 }
  0x2e   : > { %3429 = vst [vmem:[#allocation17_spill] sm:$0xff] %v2130_v44  ;;  %vm640_vm12 = vcmp.eq.s32.totalorder %v2001_v11, %v2012_v22  ;;  %1545 = vmatpush.msk.msra.mxu0 %vm386_vm6, %v3406_v39  ;;  %1559 = vmatpush.msk.msra.mxu1 %vm387_vm7, %v3406_v39  ;;  %v2251_v57 = vsel %vm384_vm10, 1.0, %v1865_v30  ;;  %v2254_v58 = vsel %vm385_vm11, 1.0, %v1865_v30  ;;  %vm641_vm13 = vcmp.eq.s32.totalorder %v2001_v11, %v2014_v23 }
  0x2f   : > { %3430 = vst [vmem:[#allocation18_spill] sm:$0xff] %v2143_v45  ;;  %v2260_v59 = vsel %vm640_vm12, 1.0, %v1865_v30  ;;  %1602 = vmatpush.msk.msra.mxu2 %vm644_vm4, %v3406_v39  ;;  %1616 = vmatpush.msk.msra.mxu3 %vm645_vm5, %v3406_v39  ;;  %v2276_v60 = vsel %vm641_vm13, 1.0, %v1865_v30  ;;  %vm382_vm14 = vcmp.eq.s32.totalorder %v1992_v7, %v2016_v24  ;;  %vm383_vm15 = vcmp.eq.s32.totalorder %v1992_v7, %v2018_v26 }
  0x30   : > { %3431 = vst [vmem:[#allocation19_spill] sm:$0xff] %v2146_v46  ;;  %vm638_vm1 = vcmp.eq.s32.totalorder %v2004_v12, %v2012_v22  ;;  %1546 = vmatpush.msk.msra.mxu0 %vm384_vm10, %v3406_v39  ;;  %1560 = vmatpush.msk.msra.mxu1 %vm385_vm11, %v3406_v39  ;;  %v2287_v61 = vsel %vm382_vm14, 1.0, %v1865_v30  ;;  %v2290_v62 = vsel %vm383_vm15, 1.0, %v1865_v30  ;;  %vm639_vm2 = vcmp.eq.s32.totalorder %v2004_v12, %v2014_v23 }
  0x31   : > { %3432 = vst [vmem:[#allocation20_spill] sm:$0xff] %v2152_v47  ;;  %v2296_v63 = vsel %vm638_vm1, 1.0, %v1865_v30  ;;  %1603 = vmatpush.msk.msra.mxu2 %vm642_vm8, %v3406_v39  ;;  %1617 = vmatpush.msk.msra.mxu3 %vm643_vm9, %v3406_v39  ;;  %v2312_v9 = vsel %vm639_vm2, 1.0, %v1865_v30  ;;  %vm380_vm3 = vcmp.eq.s32.totalorder %v1995_v8, %v2016_v24  ;;  %vm381_vm4 = vcmp.eq.s32.totalorder %v1995_v8, %v2018_v26 }
  0x32   : > { %3433 = vst [vmem:[#allocation21_spill] sm:$0xff] %v2168_v48  ;;  %vm636_vm5 = vcmp.eq.s32.totalorder %v2007_v13, %v2012_v22  ;;  %1547 = vmatpush.msk.msra.mxu0 %vm382_vm14, %v3406_v39  ;;  %1561 = vmatpush.msk.msra.mxu1 %vm383_vm15, %v3406_v39  ;;  %v2323_v14 = vsel %vm380_vm3, 1.0, %v1865_v30  ;;  %v2326_v15 = vsel %vm381_vm4, 1.0, %v1865_v30  ;;  %vm637_vm6 = vcmp.eq.s32.totalorder %v2007_v13, %v2014_v23 }
  0x33   : > { %3434 = vst [vmem:[#allocation22_spill] sm:$0xff] %v2179_v49  ;;  %v2332_v16 = vsel %vm636_vm5, 1.0, %v1865_v30  ;;  %1604 = vmatpush.msk.msra.mxu2 %vm640_vm12, %v3406_v39  ;;  %1618 = vmatpush.msk.msra.mxu3 %vm641_vm13, %v3406_v39  ;;  %v2348_v17 = vsel %vm637_vm6, 1.0, %v1865_v30  ;;  %vm378_vm7 = vcmp.eq.s32.totalorder %v1998_v10, %v2016_v24  ;;  %vm379_vm8 = vcmp.eq.s32.totalorder %v1998_v10, %v2018_v26 }
  0x34   : > { %3435 = vst [vmem:[#allocation23_spill] sm:$0xff] %v2182_v50  ;;  %vm634_vm9 = vcmp.eq.s32.totalorder %v2010_v18, %v2012_v22  ;;  %1548 = vmatpush.msk.msra.mxu0 %vm380_vm3, %v3406_v39  ;;  %1562 = vmatpush.msk.msra.mxu1 %vm381_vm4, %v3406_v39  ;;  %v2359_v19 = vsel %vm378_vm7, 1.0, %v1865_v30  ;;  %v2362_v20 = vsel %vm379_vm8, 1.0, %v1865_v30  ;;  %vm635_vm10 = vcmp.eq.s32.totalorder %v2010_v18, %v2014_v23 }
  0x35   : > { %3436 = vst [vmem:[#allocation24_spill] sm:$0xff] %v2188_v51  ;;  %v2368_v21 = vsel %vm634_vm9, 1.0, %v1865_v30  ;;  %1605 = vmatpush.msk.msra.mxu2 %vm638_vm1, %v3406_v39  ;;  %1619 = vmatpush.msk.msra.mxu3 %vm639_vm2, %v3406_v39  ;;  %v2384_v25 = vsel %vm635_vm10, 1.0, %v1865_v30  ;;  %vm376_vm11 = vcmp.eq.s32.totalorder %v2001_v11, %v2016_v24  ;;  %vm377_vm12 = vcmp.eq.s32.totalorder %v2001_v11, %v2018_v26 }
  0x36   : > { %3437 = vst [vmem:[#allocation25_spill] sm:$0xff] %v2204_v52  ;;  %vm632_vm13 = vcmp.eq.s32.totalorder %v1970_v1, %v2012_v22  ;;  %1549 = vmatpush.msk.msra.mxu0 %vm378_vm7, %v3406_v39  ;;  %1563 = vmatpush.msk.msra.mxu1 %vm379_vm8, %v3406_v39  ;;  %v2395_v0 = vsel %vm376_vm11, 1.0, %v1865_v30  ;;  %v2398_v32 = vsel %vm377_vm12, 1.0, %v1865_v30  ;;  %vm633_vm14 = vcmp.eq.s32.totalorder %v1970_v1, %v2014_v23 }
  0x37   : > { %3438 = vst [vmem:[#allocation26_spill] sm:$0xff] %v2215_v53  ;;  %v2404_v31 = vsel %vm632_vm13, 1.0, %v1865_v30  ;;  %1606 = vmatpush.msk.msra.mxu2 %vm636_vm5, %v3406_v39  ;;  %1620 = vmatpush.msk.msra.mxu3 %vm637_vm6, %v3406_v39  ;;  %v2420_v42 = vsel %vm633_vm14, 1.0, %v1865_v30  ;;  %vm1044_vm15 = vcmp.eq.s32.totalorder %v1974_v2, %v2020_v27  ;;  %vm1045_vm1 = vcmp.eq.s32.totalorder %v1974_v2, %v2022_v28 }
  0x38   : > { %3439 = vst [vmem:[#allocation27_spill] sm:$0xff] %v2218_v54  ;;  %vm374_vm2 = vcmp.eq.s32.totalorder %v2004_v12, %v2016_v24  ;;  %1550 = vmatpush.msk.msra.mxu0 %vm376_vm11, %v3406_v39  ;;  %1564 = vmatpush.msk.msra.mxu1 %vm377_vm12, %v3406_v39  ;;  %v2431_v41 = vsel %vm1044_vm15, 1.0, %v1865_v30  ;;  %v2434_v34 = vsel %vm1045_vm1, 1.0, %v1865_v30  ;;  %vm375_vm3 = vcmp.eq.s32.totalorder %v2004_v12, %v2018_v26 }
  0x39   : > { %3440 = vst [vmem:[#allocation28_spill] sm:$0xff] %v2251_v57  ;;  %v2437_v33 = vsel %vm374_vm2, 1.0, %v1865_v30  ;;  %1607 = vmatpush.msk.msra.mxu2 %vm634_vm9, %v3406_v39  ;;  %1621 = vmatpush.msk.msra.mxu3 %vm635_vm10, %v3406_v39  ;;  %v2450_v46 = vsel %vm375_vm3, 1.0, %v1865_v30  ;;  %vm1042_vm4 = vcmp.eq.s32.totalorder %v1977_v3, %v2020_v27  ;;  %vm1043_vm5 = vcmp.eq.s32.totalorder %v1977_v3, %v2022_v28 }
  0x3a   : > { %3441 = vst [vmem:[#allocation29_spill] sm:$0xff] %v2254_v58  ;;  %vm372_vm6 = vcmp.eq.s32.totalorder %v2007_v13, %v2016_v24  ;;  %1551 = vmatpush.msk.msra.mxu0 %vm374_vm2, %v3406_v39  ;;  %1565 = vmatpush.msk.msra.mxu1 %vm375_vm3, %v3406_v39  ;;  %v2464_v45 = vsel %vm1042_vm4, 1.0, %v1865_v30  ;;  %v2470_v37 = vsel %vm1043_vm5, 1.0, %v1865_v30  ;;  %vm373_vm7 = vcmp.eq.s32.totalorder %v2007_v13, %v2018_v26 }
  0x3b   : > { %3442 = vst [vmem:[#allocation30_spill] sm:$0xff] %v2287_v61  ;;  %v2476_v36 = vsel %vm372_vm6, 1.0, %v1865_v30  ;;  %1608 = vmatpush.msk.msra.mxu2 %vm632_vm13, %v3406_v39  ;;  %1622 = vmatpush.msk.msra.mxu3 %vm633_vm14, %v3406_v39  ;;  %vm1040_vm8 = vcmp.eq.s32.totalorder %v1980_v4, %v2020_v27  ;;  %vm1041_vm9 = vcmp.eq.s32.totalorder %v1980_v4, %v2022_v28 }
  0x3c   : > { %3443 = vst [vmem:[#allocation31_spill] sm:$0xff] %v2290_v62  ;;  %vm370_vm10 = vcmp.eq.s32.totalorder %v2010_v18, %v2016_v24  ;;  %v2505_v22 = vsel %vm1040_vm8, 1.0, %v1865_v30  ;;  %v2511_v23 = vsel %vm1041_vm9, 1.0, %v1865_v30  ;;  %vm371_vm11 = vcmp.eq.s32.totalorder %v2010_v18, %v2018_v26 }
  0x3d   : > { %3444 = vst [vmem:[#allocation32_spill] sm:$0xff] %v2323_v14  ;;  %1704 = vmatpush.msk.msrb.mxu2 %vm450_vm0, %v2431_v41  ;;  %1718 = vmatpush.msk.msrb.mxu3 %vm450_vm0, %v2434_v34  ;;  %v2517_v39 = vsel %vm370_vm10, 1.0, %v1865_v30  ;;  %vm1038_vm12 = vcmp.eq.s32.totalorder %v1986_v5, %v2020_v27  ;;  %vm1039_vm13 = vcmp.eq.s32.totalorder %v1986_v5, %v2022_v28 }
  0x3e   : > { %3445 = vst [vmem:[#allocation33_spill] sm:$0xff] %v2326_v15  ;;  %vm368_vm14 = vcmp.eq.s32.totalorder %v1970_v1, %v2016_v24  ;;  %vm369_vm15 = vcmp.eq.s32.totalorder %v1970_v1, %v2018_v26  ;;  %vm850_vm1 = vcmp.eq.s32.totalorder %v1974_v2, %v2024_v29  ;;  %vm851_vm2 = vcmp.eq.s32.totalorder %v1974_v2, %v2062_v35 }
  0x3f   : > { %3446 = vst [vmem:[#allocation34_spill] sm:$0xff] %v2431_v41  ;;  %v2527_v41 = vsel %vm371_vm11, 1.0, %v1865_v30  ;;  %v2569_v50 = vsel %vm369_vm15, 1.0, %v1865_v30  ;;  %vm1036_vm3 = vcmp.eq.s32.totalorder %v1989_v6, %v2020_v27  ;;  %v2586_v26 = vsel %vm850_vm1, 1.0, %v1865_v30 }
  0x40   : > { %3447 = vst [vmem:[#allocation35_spill] sm:$0xff] %v2434_v34  ;;  %v3452_v34 = vmov 1.0   ;;  %v2589_v49 = vsel %vm851_vm2, 1.0, %v1865_v30  ;;  %v2595_v2 = vsel %vm1036_vm3, 1.0, %v1865_v30  ;;  %vm1031_vm1 = vcmp.eq.s32.totalorder %v1998_v10, %v2022_v28 }
  0x41   : > { %3448 = vst [vmem:[#allocation36_spill] sm:$0xff] %v2464_v45  ;;  %1552 = vmatpush.msk.msra.mxu0 %vm372_vm6, %v3452_v34  ;;  %1566 = vmatpush.msk.msra.mxu1 %vm373_vm7, %v3452_v34  ;;  %v2547_v45 = vsel %vm1038_vm12, 1.0, %v1865_v30  ;;  %vm849_vm6 = vcmp.eq.s32.totalorder %v1977_v3, %v2062_v35  ;;  %vm842_vm2 = vcmp.eq.s32.totalorder %v1989_v6, %v2024_v29 }
  0x42   : > { %3449 = vst [vmem:[#allocation37_spill] sm:$0xff] %v2470_v37  ;;  %v2489_v37 = vsel %vm373_vm7, 1.0, %v1865_v30  ;;  %1705 = vmatpush.msk.msrb.mxu2 %vm1042_vm4, %v3452_v34  ;;  %1719 = vmatpush.msk.msrb.mxu3 %vm1043_vm5, %v3452_v34  ;;  %vm1037_vm4 = vcmp.eq.s32.totalorder %v1989_v6, %v2022_v28  ;;  %vm848_vm5 = vcmp.eq.s32.totalorder %v1977_v3, %v2024_v29 }
  0x43   : > { %3450 = vst [vmem:[#allocation38_spill] sm:$0xff] %v2505_v22  ;;  %v2559_v22 = vsel %vm368_vm14, 1.0, %v1865_v30  ;;  %1553 = vmatpush.msk.msra.mxu0 %vm370_vm10, %v3452_v34  ;;  %1567 = vmatpush.msk.msra.mxu1 %vm371_vm11, %v3452_v34  ;;  %vm1034_vm7 = vcmp.eq.s32.totalorder %v1992_v7, %v2020_v27  ;;  %v2628_v24 = vsel %vm848_vm5, 1.0, %v1865_v30  ;;  %vm847_vm10 = vcmp.eq.s32.totalorder %v1980_v4, %v2062_v35 }
  0x44   : > { %3451 = vst [vmem:[#allocation39_spill] sm:$0xff] %v2511_v23  ;;  %v2553_v23 = vsel %vm1039_vm13, 1.0, %v1865_v30  ;;  %1706 = vmatpush.msk.msrb.mxu2 %vm1040_vm8, %v3452_v34  ;;  %1720 = vmatpush.msk.msrb.mxu3 %vm1041_vm9, %v3452_v34  ;;  %v2640_v40 = vsel %vm1034_vm7, 1.0, %v1865_v30  ;;  %vm1035_vm8 = vcmp.eq.s32.totalorder %v1992_v7, %v2022_v28  ;;  %vm846_vm9 = vcmp.eq.s32.totalorder %v1980_v4, %v2024_v29 }
  0x45   : > { %3453 = vst [vmem:[#allocation40_spill] sm:$0xff] %v2547_v45  ;;  %1554 = vmatpush.msk.msra.mxu0 %vm368_vm14, %v3452_v34  ;;  %1568 = vmatpush.msk.msra.mxu1 %vm369_vm15, %v3452_v34  ;;  %v2634_v45 = vsel %vm849_vm6, 1.0, %v1865_v30  ;;  %vm1032_vm11 = vcmp.eq.s32.totalorder %v1995_v8, %v2020_v27  ;;  %vm845_vm14 = vcmp.eq.s32.totalorder %v1986_v5, %v2062_v35  ;;  %v2768_v4 = vsel %vm842_vm2, 1.0, %v1865_v30 }
  0x46   : > { %3454 = vst [vmem:[#allocation41_spill] sm:$0xff] %v2553_v23  ;;  %v2608_v23 = vsel %vm1037_vm4, 1.0, %v1865_v30  ;;  %1707 = vmatpush.msk.msrb.mxu2 %vm1038_vm12, %v3452_v34  ;;  %1721 = vmatpush.msk.msrb.mxu3 %vm1039_vm13, %v3452_v34  ;;  %vm1033_vm12 = vcmp.eq.s32.totalorder %v1995_v8, %v2022_v28  ;;  %vm844_vm13 = vcmp.eq.s32.totalorder %v1986_v5, %v2024_v29  ;;  %v2813_v5 = vld [vmem:[%s3392_s1] sm:$0xff] }
  0x47   : > { %3455 = vst [vmem:[#allocation42_spill] sm:$0xff] %v2586_v26  ;;  %1650 = vmatpush.msk.msrb.mxu0 %vm450_vm0, %v2586_v26  ;;  %1664 = vmatpush.msk.msrb.mxu1 %vm450_vm0, %v2589_v49  ;;  %v2678_v26 = vsel %vm847_vm10, 1.0, %v1865_v30  ;;  %vm1030_vm15 = vcmp.eq.s32.totalorder %v1998_v10, %v2020_v27  ;;  %v2720_v3 = vsel %vm844_vm13, 1.0, %v1865_v30 }
  0x48   : > { %3456 = vst [vmem:[#allocation43_spill] sm:$0xff] %v2589_v49  ;;  %1708 = vmatpush.msk.msrb.mxu2 %vm1036_vm3, %v3452_v34  ;;  %1722 = vmatpush.msk.msrb.mxu3 %vm1037_vm4, %v3452_v34  ;;  %v2672_v49 = vsel %vm846_vm9, 1.0, %v1865_v30  ;;  %v2732_v38 = vsel %vm1030_vm15, 1.0, %v1865_v30  ;;  %vm843_vm3 = vcmp.eq.s32.totalorder %v1989_v6, %v2062_v35  ;;  %vm1028_vm4 = vcmp.eq.s32.totalorder %v2001_v11, %v2020_v27 }
  0x49   : > { %3457 = vst [vmem:[#allocation44_spill] sm:$0xff] %v2595_v2  ;;  %1651 = vmatpush.msk.msrb.mxu0 %vm848_vm5, %v3452_v34  ;;  %1665 = vmatpush.msk.msrb.mxu1 %vm849_vm6, %v3452_v34  ;;  %v2780_v54 = vsel %vm1028_vm4, 1.0, %v1865_v30  ;;  %vm1029_vm5 = vcmp.eq.s32.totalorder %v2001_v11, %v2022_v28  ;;  %vm446_vm6 = vcmask 818176  }
  0x4a   : > { %3458 = vst [vmem:[#allocation45_spill] sm:$0xff] %v2608_v23  ;;  %1709 = vmatpush.msk.msrb.mxu2 %vm1034_vm7, %v3452_v34  ;;  %1723 = vmatpush.msk.msrb.mxu3 %vm1035_vm8, %v3452_v34  ;;  %v2796_v53 = vsel %vm1029_vm5, 1.0, %v1865_v30  ;;  %vm840_vm7 = vcmp.eq.s32.totalorder %v1992_v7, %v2024_v29 }
  0x4b   : > { %3459 = vst [vmem:[#allocation46_spill] sm:$0xff] %v2628_v24  ;;  %v2684_v24 = vsel %vm1032_vm11, 1.0, %v1865_v30  ;;  %1652 = vmatpush.msk.msrb.mxu0 %vm846_vm9, %v3452_v34  ;;  %1666 = vmatpush.msk.msrb.mxu1 %vm847_vm10, %v3452_v34  ;;  %v2819_v23 = vsel %vm840_vm7, 1.0, %v1865_v30  ;;  %vm1026_vm9 = vcmp.eq.s32.totalorder %v2004_v12, %v2020_v27  ;;  %vm1027_vm10 = vcmp.eq.s32.totalorder %v2004_v12, %v2022_v28 }
  0x4c   : > { %3460 = vst [vmem:[#allocation47_spill] sm:$0xff] %v2634_v45  ;;  %v2652_v45 = vsel %vm1035_vm8, 1.0, %v1865_v30  ;;  %1710 = vmatpush.msk.msrb.mxu2 %vm1032_vm11, %v3452_v34  ;;  %1724 = vmatpush.msk.msrb.mxu3 %vm1033_vm12, %v3452_v34  ;;  %vm841_vm8 = vcmp.eq.s32.totalorder %v1992_v7, %v2062_v35  ;;  %vm838_vm11 = vcmp.eq.s32.totalorder %v1995_v8, %v2024_v29 }
  0x4d   : > { %3461 = vst [vmem:[#allocation48_spill] sm:$0xff] %v2640_v40  ;;  %1653 = vmatpush.msk.msrb.mxu0 %vm844_vm13, %v3452_v34  ;;  %1667 = vmatpush.msk.msrb.mxu1 %vm845_vm14, %v3452_v34  ;;  %v2825_v2 = vsel %vm841_vm8, 1.0, %v1865_v30  ;;  %v2867_v6 = vsel %vm838_vm11, 1.0, %v1865_v30  ;;  %vm1024_vm13 = vcmp.eq.s32.totalorder %v2007_v13, %v2020_v27 }
  0x4e   : > { %3462 = vst [vmem:[#allocation49_spill] sm:$0xff] %v2652_v45  ;;  %1711 = vmatpush.msk.msrb.mxu2 %vm1030_vm15, %v3452_v34  ;;  %1725 = vmatpush.msk.msrb.mxu3 %vm1031_vm1, %v3452_v34  ;;  %v2887_v43 = vsel %vm1024_vm13, 1.0, %v1865_v30  ;;  %vm836_vm15 = vcmp.eq.s32.totalorder %v1998_v10, %v2024_v29 }
  0x4f   : > { %3463 = vst [vmem:[#allocation50_spill] sm:$0xff] %v2672_v49  ;;  %v2726_v49 = vsel %vm845_vm14, 1.0, %v1865_v30  ;;  %1654 = vmatpush.msk.msrb.mxu0 %vm842_vm2, %v3452_v34  ;;  %1668 = vmatpush.msk.msrb.mxu1 %vm843_vm3, %v3452_v34  ;;  %vm1025_vm14 = vcmp.eq.s32.totalorder %v2007_v13, %v2022_v28  ;;  %v2911_v57 = vsel %vm836_vm15, 1.0, %v1865_v30  ;;  %vm1022_vm2 = vcmp.eq.s32.totalorder %v2010_v18, %v2020_v27 }
  0x50   : > { %3464 = vst [vmem:[#allocation51_spill] sm:$0xff] %v2678_v26  ;;  %v2700_v26 = vsel %vm1033_vm12, 1.0, %v1865_v30  ;;  %vm839_vm12 = vcmp.eq.s32.totalorder %v1995_v8, %v2062_v35  ;;  %1712 = vmatpush.msk.msrb.mxu2 %vm1028_vm4, %v3452_v34  ;;  %1726 = vmatpush.msk.msrb.mxu3 %vm1029_vm5, %v3452_v34  ;;  %v2893_v58 = vsel %vm1025_vm14, 1.0, %v1865_v30  ;;  %v2935_v7 = vsel %vm1022_vm2, 1.0, %v1865_v30 }
  0x51   : > { %3465 = vst [vmem:[#allocation52_spill] sm:$0xff] %v2684_v24  ;;  %v2873_v44 = vsel %vm839_vm12, 1.0, %v1865_v30  ;;  %1609 = vmatmul.msk.f32.vlgmr.msra.gmra.mxu2 %vm446_vm6, %v2813_v5  ;;  %1623 = vmatmul.msk.f32.vlgmr.msra.gmra.mxu3 %vm446_vm6, %v2813_v5  ;;  %vm834_vm4 = vcmp.eq.s32.totalorder %v2001_v11, %v2024_v29  ;;  %vm835_vm5 = vcmp.eq.s32.totalorder %v2001_v11, %v2062_v35 }
  0x52   : > { %3466 = vst [vmem:[#allocation53_spill] sm:$0xff] %v2700_v26  ;;  %1655 = vmatpush.msk.msrb.mxu0 %vm840_vm7, %v3452_v34  ;;  %1669 = vmatpush.msk.msrb.mxu1 %vm841_vm8, %v3452_v34  ;;  %vm1020_vm7 = vcmp.eq.s32.totalorder %v1970_v1, %v2020_v27  ;;  %vm1021_vm8 = vcmp.eq.s32.totalorder %v1970_v1, %v2022_v28  ;;  %v1217_v27 = vld [vmem:[%s3395_s4 + $0x18] sm:$0xff] }
  0x53   : > { %3467 = vst [vmem:[#allocation54_spill] sm:$0xff] %v2720_v3  ;;  %v2774_v3 = vsel %vm843_vm3, 1.0, %v1865_v30  ;;  %vm1023_vm3 = vcmp.eq.s32.totalorder %v2010_v18, %v2022_v28  ;;  %1713 = vmatpush.msk.msrb.mxu2 %vm1026_vm9, %v3452_v34  ;;  %1727 = vmatpush.msk.msrb.mxu3 %vm1027_vm10, %v3452_v34  ;;  %v2983_v8 = vsel %vm1020_vm7, 1.0, %v1865_v30  ;;  %v2989_v48 = vsel %vm1021_vm8, 1.0, %v1865_v30  ;;  %v1215_v28 = vld [vmem:[%s3395_s4 + $0x8] sm:$0xff] }
  0x54   : > { %3468 = vst [vmem:[#allocation55_spill] sm:$0xff] %v2726_v49  ;;  %v2748_v49 = vsel %vm1031_vm1, 1.0, %v1865_v30  ;;  %vm837_vm1 = vcmp.eq.s32.totalorder %v1998_v10, %v2062_v35  ;;  %v2941_v40 = vsel %vm1023_vm3, 1.0, %v1865_v30  ;;  %1656 = vmatpush.msk.msrb.mxu0 %vm838_vm11, %v3452_v34  ;;  %1670 = vmatpush.msk.msrb.mxu1 %vm839_vm12, %v3452_v34  ;;  %vm830_vm11 = vcmp.eq.s32.totalorder %v2007_v13, %v2024_v29 }
  0x55   : > { %3469 = vst [vmem:[#allocation56_spill] sm:$0xff] %v2768_v4  ;;  %v2849_v4 = vsel %vm1027_vm10, 1.0, %v1865_v30  ;;  %v2917_v45 = vsel %vm837_vm1, 1.0, %v1865_v30  ;;  %1714 = vmatpush.msk.msrb.mxu2 %vm1024_vm13, %v3452_v34  ;;  %1728 = vmatpush.msk.msrb.mxu3 %vm1025_vm14, %v3452_v34  ;;  %vm833_vm10 = vcmp.eq.s32.totalorder %v2004_v12, %v2062_v35  ;;  %vm831_vm12 = vcmp.eq.s32.totalorder %v2007_v13, %v2062_v35  ;;  %v1214_v13 = vld [vmem:[%s3395_s4] sm:$0xff] }
  0x56   : > { %3470 = vst [vmem:[#allocation57_spill] sm:$0xff] %v2774_v3  ;;  %v2843_v3 = vsel %vm1026_vm9, 1.0, %v1865_v30  ;;  %vm832_vm9 = vcmp.eq.s32.totalorder %v2004_v12, %v2024_v29  ;;  %1657 = vmatpush.msk.msrb.mxu0 %vm836_vm15, %v3452_v34  ;;  %1671 = vmatpush.msk.msrb.mxu1 %vm837_vm1, %v3452_v34  ;;  %v3013_v62 = vsel %vm833_vm10, 1.0, %v1865_v30  ;;  %v3031_v10 = vsel %vm830_vm11, 1.0, %v1865_v30  ;;  %v1216_v12 = vld [vmem:[%s3395_s4 + $0x10] sm:$0xff] }
  0x57   : > { %3471 = vst [vmem:[#allocation58_spill] sm:$0xff] %v2819_v23  ;;  %v2965_v23 = vsel %vm835_vm5, 1.0, %v1865_v30  ;;  %v3007_v47 = vsel %vm832_vm9, 1.0, %v1865_v30  ;;  %1715 = vmatpush.msk.msrb.mxu2 %vm1022_vm2, %v3452_v34  ;;  %1729 = vmatpush.msk.msrb.mxu3 %vm1023_vm3, %v3452_v34  ;;  %v3037_v61 = vsel %vm831_vm12, 1.0, %v1865_v30  ;;  %vm828_vm13 = vcmp.eq.s32.totalorder %v2010_v18, %v2024_v29 }
  0x58   : > { %3472 = vst [vmem:[#allocation59_spill] sm:$0xff] %v2825_v2  ;;  %v2959_v2 = vsel %vm834_vm4, 1.0, %v1865_v30  ;;  %vm829_vm14 = vcmp.eq.s32.totalorder %v2010_v18, %v2062_v35  ;;  %1658 = vmatpush.msk.msrb.mxu0 %vm834_vm4, %v3452_v34  ;;  %1672 = vmatpush.msk.msrb.mxu1 %vm835_vm5, %v3452_v34  ;;  %v3055_v26 = vsel %vm828_vm13, 1.0, %v1865_v30  ;;  %vm826_vm15 = vcmp.eq.s32.totalorder %v1970_v1, %v2024_v29  ;;  %v340_v18 = vld [vmem:[%s3393_s2 + $0x18] sm:$0xff]  ;;  %v342_v29 = vld [vmem:[%s3393_s2 + $0x28] sm:$0xff] }
  0x59   : > { %3473 = vst [vmem:[#allocation60_spill] sm:$0xff] %v2867_v6  ;;  %v3061_v24 = vsel %vm829_vm14, 1.0, %v1865_v30  ;;  %vm827_vm1 = vcmp.eq.s32.totalorder %v1970_v1, %v2062_v35  ;;  %1716 = vmatpush.msk.msrb.mxu2 %vm1020_vm7, %v3452_v34  ;;  %1730 = vmatpush.msk.msrb.mxu3 %vm1021_vm8, %v3452_v34  ;;  %v3079_v11 = vsel %vm826_vm15, 1.0, %v1865_v30  ;;  %v339_v1 = vld [vmem:[%s3393_s2 + $0x10] sm:$0xff]  ;;  %v337_v35 = vld [vmem:[%s3393_s2] sm:$0xff] }
  0x5a   : > { %3474 = vst [vmem:[#allocation61_spill] sm:$0xff] %v2873_v44  ;;  %v3085_v44 = vsel %vm827_vm1, 1.0, %v1865_v30  ;;  %1555 = vmatmul.msk.f32.vlgmr.msra.gmra.mxu0 %vm446_vm6, %v2813_v5  ;;  %1569 = vmatmul.msk.f32.vlgmr.msra.gmra.mxu1 %vm446_vm6, %v2813_v5  ;;  %v1867_v30 = vmov 0  }
  0x5b   : > { %1717 = vmatmul.msk.f32.vlgmr.msrb.gmra.mxu2 %vm446_vm6, %v2813_v5  ;;  %1731 = vmatmul.msk.f32.vlgmr.msrb.gmra.mxu3 %vm446_vm6, %v2813_v5 }
  0x5c   : > { %1659 = vmatpush.msk.msrb.mxu0 %vm832_vm9, %v3452_v34  ;;  %1673 = vmatpush.msk.msrb.mxu1 %vm833_vm10, %v3452_v34 }
  0x5d   : > { %1798 = vset.pattern.permute.xlu0 %v1867_v30  ;;  %1799 = vset.pattern.permute.xlu1 %v1867_v30 }
  0x5e   : > { %1660 = vmatpush.msk.msrb.mxu0 %vm830_vm11, %v3452_v34  ;;  %1674 = vmatpush.msk.msrb.mxu1 %vm831_vm12, %v3452_v34 }
  0x5f   : > { %1235 = vperm.xlu0 %1798, %v1217_v27   ;;  %1225 = vperm.xlu1 %1799, %v1215_v28   ;;  %v346_v27 = vld [vmem:[%s3393_s2 + $0x48] sm:$0xff] }
  0x60   : > { %1661 = vmatpush.msk.msrb.mxu0 %vm828_vm13, %v3452_v34  ;;  %1675 = vmatpush.msk.msrb.mxu1 %vm829_vm14, %v3452_v34  ;;  %v338_v28 = vld [vmem:[%s3393_s2 + $0x8] sm:$0xff] }
  0x61   : > { %1800 = vset.pattern.permute.xlu2 %v1867_v30  ;;  %v348_v30 = vld [vmem:[%s3393_s2 + $0x58] sm:$0xff] }
  0x62   : > { %1662 = vmatpush.msk.msrb.mxu0 %vm826_vm15, %v3452_v34  ;;  %1676 = vmatpush.msk.msrb.mxu1 %vm827_vm1, %v3452_v34  ;;  %v343_v34 = vld [vmem:[%s3393_s2 + $0x30] sm:$0xff] }
  0x63   : > { %1663 = vmatmul.msk.f32.vlgmr.msrb.gmra.mxu0 %vm446_vm6, %v2813_v5  ;;  %1677 = vmatmul.msk.f32.vlgmr.msrb.gmra.mxu1 %vm446_vm6, %v2813_v5  ;;  %v345_v5 = vld [vmem:[%s3393_s2 + $0x40] sm:$0xff]  ;;  %vm1238_vm6 = vcmask 261120  }
  0x64   : > { %499 = vperm.xlu2 %1800, %v337_v35   ;;  %v1320_v35 = vld [vmem:[%s3397_s6 + $0x8] sm:$0xff] }
  0x67   : > { %1230 = vperm.xlu0 %1798, %v1216_v12   ;;  %1220 = vperm.xlu1 %1799, %v1214_v13   ;;  %v349_v12 = vld [vmem:[%s3393_s2 + $0x60] sm:$0xf] }
  0x68   : > { %v341_v13 = vld [vmem:[%s3393_s2 + $0x20] sm:$0xff] }
  0x6c   : > { %504 = vperm.xlu2 %1800, %v338_v28  }
  0x6f   : > { %509 = vperm.xlu0 %1798, %v339_v1   ;;  %514 = vperm.xlu1 %1799, %v340_v18  }
  0x74   : > { %519 = vperm.xlu2 %1800, %v341_v13  }
  0x77   : > { %524 = vperm.xlu0 %1798, %v342_v29   ;;  %529 = vperm.xlu1 %1799, %v343_v34  }
  0x7f   : > { %539 = vperm.xlu0 %1798, %v345_v5   ;;  %544 = vperm.xlu1 %1799, %v346_v27   ;;  %v1387_v5 = vld [vmem:[%s3398_s7] sm:$0xff]  ;;  %v344_v27 = vld [vmem:[%s3393_s2 + $0x38] sm:$0xff] }
  0x80   : > { %534 = vperm.xlu2 %1800, %v344_v27   ;;  %v347_v27 = vld [vmem:[%s3393_s2 + $0x50] sm:$0xff] }
  0x87   : > { %554 = vperm.xlu0 %1798, %v348_v30   ;;  %559 = vperm.xlu1 %1799, %v349_v12  }
  0x88   : > { %549 = vperm.xlu2 %1800, %v347_v27  }
  0x8f   : > { %1328 = vperm.xlu0 %1798, %v1320_v35   ;;  %1391 = vperm.xlu1 %1799, %v1387_v5   ;;  %v1210_v35 = vld [vmem:[%s3394_s3] sm:$0xff]  ;;  %v1213_v5 = vld [vmem:[%s3394_s3 + $0x18] sm:$0xff] }
  0xd4   : > { %v733_v1 = vpop.f32.mrf.mxu2  ;;  %v753_v18 = vpop.f32.mrf.mxu3 }
  0xd7   : > { %v474_v29 = vpop.f32.mrf.mxu0  ;;  %v494_v34 = vpop.f32.mrf.mxu1 }
  0xde   : > { %v1121_v28 = vpop.f32.mrf.mxu2  ;;  %v1141_v30 = vpop.f32.mrf.mxu3 }
  0xdf   : > { %1263 = vmatpush.msra.mxu0 %v1121_v28  ;;  %1748 = vmatpush.msra.mxu2 %v1121_v28  ;;  %v500_v28 = vpop.permute.xlu2 %499 }
  0xe0   : > { %1292 = vmatpush.msra.mxu1 %v1141_v30  ;;  %1752 = vmatpush.msra.mxu3 %v1141_v30  ;;  %v927_v12 = vpop.f32.mrf.mxu0  ;;  %v947_v13 = vpop.f32.mrf.mxu1  ;;  %v757_v27 = vmul.f32 %v2420_v42, %v500_v28 }
  0xe1   : > { %1264 = vmatpush.msra.mxu0 %v927_v12  ;;  %1749 = vmatpush.msra.mxu2 %v927_v12 }
  0xe2   : > { %1293 = vmatpush.msra.mxu1 %v947_v13  ;;  %1753 = vmatpush.msra.mxu3 %v947_v13  ;;  %v562_v13 = vmul.f32 %v2559_v22, %v500_v28 }
  0xe3   : > { %1265 = vmatpush.msra.mxu0 %v733_v1  ;;  %1750 = vmatpush.msra.mxu2 %v733_v1  ;;  %v1211_v1 = vld [vmem:[%s3394_s3 + $0x8] sm:$0xff] }
  0xe4   : > { %1294 = vmatpush.msra.mxu1 %v753_v18  ;;  %1754 = vmatpush.msra.mxu3 %v753_v18  ;;  %v1212_v18 = vld [vmem:[%s3394_s3 + $0x10] sm:$0xff] }
  0xe5   : > { %1266 = vmatpush.msra.mxu0 %v474_v29  ;;  %1751 = vmatpush.msra.mxu2 %v474_v29  ;;  %v3208_v29 = vpop.permute.xlu0 %1235 }
  0xe6   : > { %1295 = vmatpush.msra.mxu1 %v494_v34  ;;  %1755 = vmatpush.msra.mxu3 %v494_v34  ;;  %3475 = vst [vmem:[#allocation62_spill] sm:$0xff] %v3208_v29  ;;  %v3210_v34 = vpop.permute.xlu1 %1225  ;;  %v1144_v29 = vmul.f32 %v2983_v8, %v500_v28 }
  0xe7   : > { %1732 = vmatmul.msk.f32.vlgmr.msra.gmra.mxu0 %vm1238_vm6, %v1210_v35  ;;  %1736 = vmatmul.msk.f32.vlgmr.msra.gmra.mxu1 %vm1238_vm6, %v1210_v35  ;;  %3476 = vst [vmem:[#allocation63_spill] sm:$0xff] %v3210_v34  ;;  %v563_v35 = vmul.f32 %v2569_v50, %v500_v28  ;;  %v1145_v34 = vmul.f32 %v2989_v48, %v500_v28  ;;  %v505_v6 = vpop.permute.xlu2 %504 }
  0xe8   : > { %1735 = vmatmul.msk.f32.vlgmr.msra.gmra.mxu2 %vm1238_vm6, %v1213_v5  ;;  %1739 = vmatmul.msk.f32.vlgmr.msra.gmra.mxu3 %vm1238_vm6, %v1213_v5  ;;  %v756_v5 = vmul.f32 %v2404_v31, %v500_v28  ;;  %v758_v22 = vmul.f32 %v2368_v21, %v505_v6  ;;  %v759_v50 = vmul.f32 %v2384_v25, %v505_v6 }
  0xe9   : > { %v952_v31 = vmul.f32 %v3055_v26, %v505_v6  ;;  %v953_v42 = vmul.f32 %v3061_v24, %v505_v6 }
  0xea   : > { %v782_v48 = vadd.f32 %v758_v22, %v756_v5 }
  0xed   : > { %v3212_v30 = vpop.permute.xlu0 %1230 }
  0xee   : > { %3477 = vst [vmem:[#allocation64_spill] sm:$0xff] %v3212_v30  ;;  %v3214_v12 = vpop.permute.xlu1 %1220  ;;  %v564_v30 = vmul.f32 %v2517_v39, %v505_v6 }
  0xef   : > { %1733 = vmatmul.msk.f32.gmra.mxu0 %vm1238_vm6, %v1211_v1  ;;  %1737 = vmatmul.msk.f32.gmra.mxu1 %vm1238_vm6, %v1211_v1  ;;  %3478 = vst [vmem:[#allocation65_spill] sm:$0xff] %v3214_v12  ;;  %v950_v1 = vmul.f32 %v3079_v11, %v500_v28  ;;  %v565_v12 = vmul.f32 %v2527_v41, %v505_v6 }
  0xf0   : > { %v1146_v11 = vmul.f32 %v2935_v7, %v505_v6  ;;  %v588_v8 = vadd.f32 %v564_v30, %v562_v13 }
  0xf1   : > { %v607_v52 = vadd.f32 %v565_v12, %v563_v35  ;;  %v976_v51 = vadd.f32 %v952_v31, %v950_v1  ;;  %v520_v31 = vpop.permute.xlu2 %519 }
  0xf2   : > { %v1170_v15 = vadd.f32 %v1146_v11, %v1144_v29  ;;  %v1153_v11 = vmul.f32 %v2796_v53, %v520_v31 }
  0xf5   : > { %v510_v14 = vpop.permute.xlu0 %509 }
  0xf6   : > { %v566_v21 = vmul.f32 %v2476_v36, %v510_v14  ;;  %v567_v25 = vmul.f32 %v2489_v37, %v510_v14  ;;  %v760_v26 = vmul.f32 %v2332_v16, %v510_v14  ;;  %v761_v24 = vmul.f32 %v2348_v17, %v510_v14 }
  0xf7   : > { %1734 = vmatmul.msk.f32.gmra.mxu0 %vm1238_vm6, %v1212_v18  ;;  %1738 = vmatmul.msk.f32.gmra.mxu1 %vm1238_vm6, %v1212_v18  ;;  %v951_v18 = vmul.f32 %v3085_v44, %v500_v28  ;;  %v1147_v44 = vmul.f32 %v2941_v40, %v505_v6  ;;  %v801_v28 = vadd.f32 %v759_v50, %v757_v27  ;;  %v515_v27 = vpop.permute.xlu1 %514 }
  0xf8   : > { %v954_v7 = vmul.f32 %v3031_v10, %v510_v14  ;;  %v955_v40 = vmul.f32 %v3037_v61, %v510_v14  ;;  %v1148_v6 = vmul.f32 %v2887_v43, %v510_v14  ;;  %v1149_v30 = vmul.f32 %v2893_v58, %v510_v14 }
  0xf9   : > { %v995_v39 = vadd.f32 %v953_v42, %v951_v18  ;;  %v1189_v41 = vadd.f32 %v1147_v44, %v1145_v34  ;;  %v589_v12 = vadd.f32 %v588_v8, %v566_v21  ;;  %v608_v29 = vadd.f32 %v607_v52, %v567_v25 }
  0xfa   : > { %v783_v34 = vadd.f32 %v782_v48, %v760_v26  ;;  %v802_v13 = vadd.f32 %v801_v28, %v761_v24  ;;  %v977_v35 = vadd.f32 %v976_v51, %v954_v7  ;;  %v1171_v5 = vadd.f32 %v1170_v15, %v1148_v6 }
  0xfb   : > { %v996_v36 = vadd.f32 %v995_v39, %v955_v40  ;;  %v1190_v37 = vadd.f32 %v1189_v41, %v1149_v30  ;;  %v568_v16 = vmul.f32 %v2437_v33, %v515_v27  ;;  %v569_v17 = vmul.f32 %v2450_v46, %v515_v27 }
  0xfc   : > { %v762_v10 = vmul.f32 %v2296_v63, %v515_v27  ;;  %v763_v61 = vmul.f32 %v2312_v9, %v515_v27  ;;  %v956_v43 = vmul.f32 %v3007_v47, %v515_v27  ;;  %v957_v58 = vmul.f32 %v3013_v62, %v515_v27 }
  0xfd   : > { %v1150_v52 = vmul.f32 %v2843_v3, %v515_v27  ;;  %v1151_v51 = vmul.f32 %v2849_v4, %v515_v27  ;;  %v590_v14 = vadd.f32 %v589_v12, %v568_v16  ;;  %v609_v15 = vadd.f32 %v608_v29, %v569_v17  ;;  %v525_v21 = vpop.permute.xlu0 %524  ;;  %v3485_v27 = vld [vmem:[#allocation52_spill] sm:$0xff]  ;;  %v3486_v17 = vld [vmem:[#allocation53_spill] sm:$0xff] }
  0xfe   : > { %v784_v1 = vadd.f32 %v783_v34, %v762_v10  ;;  %v803_v18 = vadd.f32 %v802_v13, %v763_v61  ;;  %v978_v22 = vadd.f32 %v977_v35, %v956_v43  ;;  %v997_v33 = vadd.f32 %v996_v36, %v957_v58 }
  0xff   : > { %v1172_v50 = vadd.f32 %v1171_v5, %v1150_v52  ;;  %v1191_v46 = vadd.f32 %v1190_v37, %v1151_v51  ;;  %v570_v63 = vmul.f32 %v2395_v0, %v520_v31  ;;  %v571_v9 = vmul.f32 %v2398_v32, %v520_v31  ;;  %v530_v29 = vpop.permute.xlu1 %529 }
 0x100   : > { %v764_v47 = vmul.f32 %v2260_v59, %v520_v31  ;;  %v765_v62 = vmul.f32 %v2276_v60, %v520_v31  ;;  %v958_v3 = vmul.f32 %v2959_v2, %v520_v31  ;;  %v959_v4 = vmul.f32 %v2965_v23, %v520_v31 }
 0x101   : > { %v1152_v42 = vmul.f32 %v2780_v54, %v520_v31  ;;  %v591_v44 = vadd.f32 %v590_v14, %v570_v63  ;;  %v610_v8 = vadd.f32 %v609_v15, %v571_v9  ;;  %v1192_v32 = vadd.f32 %v1191_v46, %v1153_v11  ;;  %v3489_v31 = vld [vmem:[#allocation20_spill] sm:$0xff]  ;;  %v3490_v9 = vld [vmem:[#allocation21_spill] sm:$0xff] }
 0x102   : > { %v785_v48 = vadd.f32 %v784_v1, %v764_v47  ;;  %v804_v28 = vadd.f32 %v803_v18, %v765_v62  ;;  %v979_v39 = vadd.f32 %v978_v22, %v958_v3  ;;  %v998_v0 = vadd.f32 %v997_v33, %v959_v4  ;;  %v535_v18 = vpop.permute.xlu2 %534  ;;  %v3487_v22 = vld [vmem:[#allocation30_spill] sm:$0xff]  ;;  %v3492_v4 = vld [vmem:[#allocation59_spill] sm:$0xff]  ;;  %v3493_v11 = vld [vmem:[#allocation48_spill] sm:$0xff] }
 0x103   : > { %v1173_v41 = vadd.f32 %v1172_v50, %v1152_v42  ;;  %v572_v59 = vmul.f32 %v2359_v19, %v525_v21  ;;  %v573_v60 = vmul.f32 %v2362_v20, %v525_v21  ;;  %v766_v2 = vmul.f32 %v2224_v55, %v525_v21  ;;  %v3479_v55 = vld [vmem:[#allocation32_spill] sm:$0xff]  ;;  %v3488_v50 = vld [vmem:[#allocation31_spill] sm:$0xff]  ;;  %v3491_v62 = vld [vmem:[#allocation58_spill] sm:$0xff] }
 0x104   : > { %v767_v23 = vmul.f32 %v2240_v56, %v525_v21  ;;  %v960_v54 = vmul.f32 %v2911_v57, %v525_v21  ;;  %v961_v53 = vmul.f32 %v2917_v45, %v525_v21  ;;  %v1154_v25 = vmul.f32 %v2732_v38, %v525_v21  ;;  %v3480_v56 = vld [vmem:[#allocation33_spill] sm:$0xff]  ;;  %v3481_v57 = vld [vmem:[#allocation24_spill] sm:$0xff] }
 0x105   : > { %v1155_v26 = vmul.f32 %v2748_v49, %v525_v21  ;;  %v592_v24 = vadd.f32 %v591_v44, %v572_v59  ;;  %v611_v7 = vadd.f32 %v610_v8, %v573_v60  ;;  %v786_v40 = vadd.f32 %v785_v48, %v766_v2  ;;  %v3482_v45 = vld [vmem:[#allocation25_spill] sm:$0xff]  ;;  %v3483_v38 = vld [vmem:[#allocation60_spill] sm:$0xff]  ;;  %v540_v2 = vpop.permute.xlu0 %539 }
 0x106   : > { %v805_v6 = vadd.f32 %v804_v28, %v767_v23  ;;  %v980_v30 = vadd.f32 %v979_v39, %v960_v54  ;;  %v999_v19 = vadd.f32 %v998_v0, %v961_v53  ;;  %v1174_v12 = vadd.f32 %v1173_v41, %v1154_v25  ;;  %v3484_v49 = vld [vmem:[#allocation61_spill] sm:$0xff]  ;;  %v3495_v23 = vld [vmem:[#allocation28_spill] sm:$0xff] }
 0x107   : > { %v1193_v20 = vadd.f32 %v1192_v32, %v1155_v26  ;;  %v574_v34 = vmul.f32 %v3479_v55, %v530_v29  ;;  %v575_v13 = vmul.f32 %v3480_v56, %v530_v29  ;;  %v768_v35 = vmul.f32 %v3481_v57, %v530_v29  ;;  %v3494_v8 = vld [vmem:[#allocation49_spill] sm:$0xff]  ;;  %v3497_v26 = vld [vmem:[#allocation16_spill] sm:$0xff] }
 0x108   : > { %v769_v36 = vmul.f32 %v3482_v45, %v530_v29  ;;  %v962_v5 = vmul.f32 %v3483_v38, %v530_v29  ;;  %v963_v37 = vmul.f32 %v3484_v49, %v530_v29  ;;  %v1156_v16 = vmul.f32 %v3485_v27, %v530_v29  ;;  %v3496_v53 = vld [vmem:[#allocation29_spill] sm:$0xff]  ;;  %v545_v49 = vpop.permute.xlu1 %544 }
 0x109   : > { %v1157_v10 = vmul.f32 %v3486_v17, %v530_v29  ;;  %v593_v61 = vadd.f32 %v592_v24, %v574_v34  ;;  %v612_v43 = vadd.f32 %v611_v7, %v575_v13  ;;  %v787_v58 = vadd.f32 %v786_v40, %v768_v35  ;;  %v3498_v7 = vld [vmem:[#allocation17_spill] sm:$0xff] }
 0x10a   : > { %v806_v52 = vadd.f32 %v805_v6, %v769_v36  ;;  %v981_v51 = vadd.f32 %v980_v30, %v962_v5  ;;  %v1000_v14 = vadd.f32 %v999_v19, %v963_v37  ;;  %v1175_v15 = vadd.f32 %v1174_v12, %v1156_v16  ;;  %v3499_v6 = vld [vmem:[#allocation56_spill] sm:$0xff]  ;;  %v3500_v19 = vld [vmem:[#allocation57_spill] sm:$0xff]  ;;  %v3503_v37 = vld [vmem:[#allocation26_spill] sm:$0xff] }
 0x10b   : > { %v1194_v1 = vadd.f32 %v1193_v20, %v1157_v10  ;;  %v576_v33 = vmul.f32 %v3487_v22, %v535_v18  ;;  %v577_v46 = vmul.f32 %v3488_v50, %v535_v18  ;;  %v770_v63 = vmul.f32 %v3489_v31, %v535_v18  ;;  %v3501_v20 = vld [vmem:[#allocation44_spill] sm:$0xff]  ;;  %v3502_v55 = vld [vmem:[#allocation45_spill] sm:$0xff]  ;;  %v3504_v16 = vld [vmem:[#allocation27_spill] sm:$0xff]  ;;  %v550_v50 = vpop.permute.xlu2 %549 }
 0x10c   : > { %v771_v47 = vmul.f32 %v3490_v9, %v535_v18  ;;  %v964_v3 = vmul.f32 %v3491_v62, %v535_v18  ;;  %v965_v42 = vmul.f32 %v3492_v4, %v535_v18  ;;  %v1158_v44 = vmul.f32 %v3493_v11, %v535_v18  ;;  %v3505_v10 = vld [vmem:[#allocation12_spill] sm:$0xff]  ;;  %v3510_v22 = vld [vmem:[#allocation41_spill] sm:$0xff] }
 0x10d   : > { %v1159_v48 = vmul.f32 %v3494_v8, %v535_v18  ;;  %v594_v28 = vadd.f32 %v593_v61, %v576_v33  ;;  %v613_v39 = vadd.f32 %v612_v43, %v577_v46  ;;  %v788_v0 = vadd.f32 %v787_v58, %v770_v63  ;;  %v3506_v43 = vld [vmem:[#allocation13_spill] sm:$0xff] }
 0x10e   : > { %v807_v41 = vadd.f32 %v806_v52, %v771_v47  ;;  %v982_v32 = vadd.f32 %v981_v51, %v964_v3  ;;  %v1001_v21 = vadd.f32 %v1000_v14, %v965_v42  ;;  %v1176_v59 = vadd.f32 %v1175_v15, %v1158_v44  ;;  %v3507_v52 = vld [vmem:[#allocation54_spill] sm:$0xff]  ;;  %v3508_v14 = vld [vmem:[#allocation55_spill] sm:$0xff] }
 0x10f   : > { %v1195_v60 = vadd.f32 %v1194_v1, %v1159_v48  ;;  %v578_v54 = vmul.f32 %v3495_v23, %v540_v2  ;;  %v579_v25 = vmul.f32 %v3496_v53, %v540_v2  ;;  %v772_v24 = vmul.f32 %v3497_v26, %v540_v2  ;;  %v3509_v1 = vld [vmem:[#allocation40_spill] sm:$0xff]  ;;  %v3511_v42 = vld [vmem:[#allocation22_spill] sm:$0xff]  ;;  %v3512_v44 = vld [vmem:[#allocation23_spill] sm:$0xff]  ;;  %v555_v53 = vpop.permute.xlu0 %554 }
 0x110   : > { %v773_v40 = vmul.f32 %v3498_v7, %v540_v2  ;;  %v966_v30 = vmul.f32 %v3499_v6, %v540_v2  ;;  %v967_v12 = vmul.f32 %v3500_v19, %v540_v2  ;;  %v1160_v29 = vmul.f32 %v3501_v20, %v540_v2  ;;  %v3513_v48 = vld [vmem:[#allocation10_spill] sm:$0xff]  ;;  %v3518_v23 = vld [vmem:[#allocation39_spill] sm:$0xff] }
 0x111   : > { %v1161_v34 = vmul.f32 %v3502_v55, %v540_v2  ;;  %v595_v56 = vadd.f32 %v594_v28, %v578_v54  ;;  %v614_v13 = vadd.f32 %v613_v39, %v579_v25  ;;  %v789_v57 = vadd.f32 %v788_v0, %v772_v24  ;;  %v3514_v39 = vld [vmem:[#allocation11_spill] sm:$0xff] }
 0x112   : > { %v808_v35 = vadd.f32 %v807_v41, %v773_v40  ;;  %v983_v45 = vadd.f32 %v982_v32, %v966_v30  ;;  %v1002_v36 = vadd.f32 %v1001_v21, %v967_v12  ;;  %v1177_v38 = vadd.f32 %v1176_v59, %v1160_v29  ;;  %v3515_v41 = vld [vmem:[#allocation50_spill] sm:$0xff]  ;;  %v3516_v21 = vld [vmem:[#allocation51_spill] sm:$0xff] }
 0x113   : > { %v1196_v5 = vadd.f32 %v1195_v60, %v1161_v34  ;;  %v580_v27 = vmul.f32 %v3503_v37, %v545_v49  ;;  %v581_v17 = vmul.f32 %v3504_v16, %v545_v49  ;;  %v774_v61 = vmul.f32 %v3505_v10, %v545_v49  ;;  %v3517_v60 = vld [vmem:[#allocation38_spill] sm:$0xff]  ;;  %v3520_v29 = vld [vmem:[#allocation19_spill] sm:$0xff]  ;;  %v3521_v34 = vld [vmem:[#allocation8_spill] sm:$0xff]  ;;  %v560_v16 = vpop.permute.xlu1 %559 }
 0x114   : > { %v775_v58 = vmul.f32 %v3506_v43, %v545_v49  ;;  %v968_v51 = vmul.f32 %v3507_v52, %v545_v49  ;;  %v969_v15 = vmul.f32 %v3508_v14, %v545_v49  ;;  %v1162_v18 = vmul.f32 %v3509_v1, %v545_v49  ;;  %v3519_v12 = vld [vmem:[#allocation18_spill] sm:$0xff]  ;;  %v3526_v37 = vld [vmem:[#allocation37_spill] sm:$0xff] }
 0x115   : > { %v1163_v33 = vmul.f32 %v3510_v22, %v545_v49  ;;  %v596_v46 = vadd.f32 %v595_v56, %v580_v27  ;;  %v615_v31 = vadd.f32 %v614_v13, %v581_v17  ;;  %v790_v63 = vadd.f32 %v789_v57, %v774_v61  ;;  %v3522_v13 = vld [vmem:[#allocation9_spill] sm:$0xff] }
 0x116   : > { %v809_v9 = vadd.f32 %v808_v35, %v775_v58  ;;  %v984_v47 = vadd.f32 %v983_v45, %v968_v51  ;;  %v1003_v62 = vadd.f32 %v1002_v36, %v969_v15  ;;  %v1178_v3 = vadd.f32 %v1177_v38, %v1162_v18  ;;  %v3523_v35 = vld [vmem:[#allocation46_spill] sm:$0xff]  ;;  %v3524_v36 = vld [vmem:[#allocation47_spill] sm:$0xff] }
 0x117   : > { %v1197_v4 = vadd.f32 %v1196_v5, %v1163_v33  ;;  %v582_v11 = vmul.f32 %v3511_v42, %v550_v50  ;;  %v583_v8 = vmul.f32 %v3512_v44, %v550_v50  ;;  %v776_v28 = vmul.f32 %v3513_v48, %v550_v50  ;;  %v3525_v5 = vld [vmem:[#allocation36_spill] sm:$0xff]  ;;  %v3527_v15 = vld [vmem:[#allocation14_spill] sm:$0xff]  ;;  %v3528_v18 = vld [vmem:[#allocation15_spill] sm:$0xff] }
 0x118   : > { %v777_v0 = vmul.f32 %v3514_v39, %v550_v50  ;;  %v970_v32 = vmul.f32 %v3515_v41, %v550_v50  ;;  %v971_v59 = vmul.f32 %v3516_v21, %v550_v50  ;;  %v1164_v2 = vmul.f32 %v3517_v60, %v550_v50  ;;  %v3529_v33 = vld [vmem:[#allocation6_spill] sm:$0xff]  ;;  %v3534_v42 = vld [vmem:[#allocation35_spill] sm:$0xff] }
 0x119   : > { %v1165_v54 = vmul.f32 %v3518_v23, %v550_v50  ;;  %v597_v25 = vadd.f32 %v596_v46, %v582_v11  ;;  %v616_v26 = vadd.f32 %v615_v31, %v583_v8  ;;  %v791_v24 = vadd.f32 %v790_v63, %v776_v28  ;;  %v3530_v46 = vld [vmem:[#allocation7_spill] sm:$0xff]  ;;  %v3531_v63 = vld [vmem:[#allocation42_spill] sm:$0xff] }
 0x11a   : > { %v810_v7 = vadd.f32 %v809_v9, %v777_v0  ;;  %v985_v40 = vadd.f32 %v984_v47, %v970_v32  ;;  %v1004_v6 = vadd.f32 %v1003_v62, %v971_v59  ;;  %v1179_v30 = vadd.f32 %v1178_v3, %v1164_v2  ;;  %v3532_v47 = vld [vmem:[#allocation43_spill] sm:$0xff]  ;;  %v3533_v3 = vld [vmem:[#allocation34_spill] sm:$0xff] }
 0x11b   : > { %v1198_v19 = vadd.f32 %v1197_v4, %v1165_v54  ;;  %v584_v20 = vmul.f32 %v3519_v12, %v555_v53  ;;  %v585_v55 = vmul.f32 %v3520_v29, %v555_v53  ;;  %v778_v56 = vmul.f32 %v3521_v34, %v555_v53 }
 0x11c   : > { %v779_v57 = vmul.f32 %v3522_v13, %v555_v53  ;;  %v972_v45 = vmul.f32 %v3523_v35, %v555_v53  ;;  %v973_v38 = vmul.f32 %v3524_v36, %v555_v53  ;;  %v1166_v49 = vmul.f32 %v3525_v5, %v555_v53 }
 0x11d   : > { %v1167_v27 = vmul.f32 %v3526_v37, %v555_v53  ;;  %v598_v17 = vadd.f32 %v597_v25, %v584_v20  ;;  %v617_v10 = vadd.f32 %v616_v26, %v585_v55  ;;  %v792_v61 = vadd.f32 %v791_v24, %v778_v56 }
 0x11e   : > { %v811_v43 = vadd.f32 %v810_v7, %v779_v57  ;;  %v986_v58 = vadd.f32 %v985_v40, %v972_v45  ;;  %v1005_v52 = vadd.f32 %v1004_v6, %v973_v38  ;;  %v1180_v51 = vadd.f32 %v1179_v30, %v1166_v49  ;;  %v1319_v7 = vld [vmem:[%s3397_s6] sm:$0xff] }
 0x11f   : > { %v1199_v14 = vadd.f32 %v1198_v19, %v1167_v27  ;;  %v586_v1 = vmul.f32 %v3527_v15, %v560_v16  ;;  %v587_v22 = vmul.f32 %v3528_v18, %v560_v16  ;;  %v780_v50 = vmul.f32 %v3529_v33, %v560_v16  ;;  %1323 = vperm.xlu2 %1800, %v1319_v7  }
 0x120   : > { %v781_v31 = vmul.f32 %v3530_v46, %v560_v16  ;;  %v974_v9 = vmul.f32 %v3531_v63, %v560_v16  ;;  %v975_v62 = vmul.f32 %v3532_v47, %v560_v16  ;;  %v1168_v4 = vmul.f32 %v3533_v3, %v560_v16 }
 0x121   : > { %v1169_v11 = vmul.f32 %v3534_v42, %v560_v16  ;;  %v599_v44 = vsel %vm450_vm0, %v586_v1, 0.0  ;;  %v618_v8 = vsel %vm450_vm0, %v587_v22, 0.0  ;;  %v793_v48 = vsel %vm450_vm0, %v780_v50, 0.0 }
 0x122   : > { %v812_v28 = vsel %vm450_vm0, %v781_v31, 0.0  ;;  %v600_v39 = vadd.f32 %v599_v44, %v598_v17  ;;  %v619_v0 = vadd.f32 %v618_v8, %v617_v10  ;;  %v794_v41 = vadd.f32 %v793_v48, %v792_v61  ;;  %v1388_v10 = vld [vmem:[%s3398_s7 + $0x8] sm:$0xff] }
 0x123   : > { %v813_v32 = vadd.f32 %v812_v28, %v811_v43  ;;  %v987_v21 = vsel %vm450_vm0, %v974_v9, 0.0  ;;  %v1006_v59 = vsel %vm450_vm0, %v975_v62, 0.0  ;;  %v1181_v60 = vsel %vm450_vm0, %v1168_v4, 0.0 }
 0x124   : > { %v1200_v2 = vsel %vm450_vm0, %v1169_v11, 0.0  ;;  %v601_v23 = vrot.slane %v600_v39, 4  ;;  %v620_v54 = vrot.slane %v619_v0, 4  ;;  %v795_v53 = vrot.slane %v794_v41, 4 }
 0x125   : > { %v814_v25 = vrot.slane %v813_v32, 4  ;;  %v988_v26 = vadd.f32 %v987_v21, %v986_v58  ;;  %v1007_v24 = vadd.f32 %v1006_v59, %v1005_v52  ;;  %v1182_v40 = vadd.f32 %v1181_v60, %v1180_v51 }
 0x126   : > { %v1201_v6 = vadd.f32 %v1200_v2, %v1199_v14  ;;  %v602_v30 = vadd.f32 %v601_v23, %v600_v39  ;;  %v621_v19 = vadd.f32 %v620_v54, %v619_v0  ;;  %v796_v12 = vadd.f32 %v795_v53, %v794_v41  ;;  %v3535_v54 = vld [vmem:[#allocation62_spill] sm:$0xff] }
 0x127   : > { %v815_v20 = vadd.f32 %v814_v25, %v813_v32  ;;  %v989_v29 = vrot.slane %v988_v26, 4  ;;  %v1008_v55 = vrot.slane %v1007_v24, 4  ;;  %v1183_v34 = vrot.slane %v1182_v40, 4  ;;  %1396 = vperm.xlu2 %1800, %v1388_v10  }
 0x128   : > { %v1202_v56 = vrot.slane %v1201_v6, 4  ;;  %v603_v13 = vrot.slane %v602_v30, 2  ;;  %v622_v57 = vrot.slane %v621_v19, 2  ;;  %v797_v35 = vrot.slane %v796_v12, 2 }
 0x129   : > { %v816_v45 = vrot.slane %v815_v20, 2  ;;  %v990_v36 = vadd.f32 %v989_v29, %v988_v26  ;;  %v1009_v38 = vadd.f32 %v1008_v55, %v1007_v24  ;;  %v1184_v5 = vadd.f32 %v1183_v34, %v1182_v40  ;;  %v3538_v34 = vld [vmem:[#allocation65_spill] sm:$0xff] }
 0x12a   : > { %v1203_v49 = vadd.f32 %v1202_v56, %v1201_v6  ;;  %v604_v37 = vadd.f32 %v603_v13, %v602_v30  ;;  %v623_v27 = vadd.f32 %v622_v57, %v621_v19  ;;  %v798_v16 = vadd.f32 %v797_v35, %v796_v12  ;;  %v3536_v30 = vld [vmem:[#allocation63_spill] sm:$0xff] }
 0x12b   : > { %v817_v17 = vadd.f32 %v816_v45, %v815_v20  ;;  %v991_v61 = vrot.slane %v990_v36, 2  ;;  %v1010_v43 = vrot.slane %v1009_v38, 2  ;;  %v1185_v58 = vrot.slane %v1184_v5, 2  ;;  %v3537_v20 = vld [vmem:[#allocation64_spill] sm:$0xff] }
 0x12c   : > { %v1204_v52 = vrot.slane %v1203_v49, 2  ;;  %v605_v51 = vrot.slane %v604_v37, 1  ;;  %v624_v14 = vrot.slane %v623_v27, 1  ;;  %v799_v15 = vrot.slane %v798_v16, 1 }
 0x12d   : > { %v818_v1 = vrot.slane %v817_v17, 1  ;;  %v992_v18 = vadd.f32 %v991_v61, %v990_v36  ;;  %v1011_v22 = vadd.f32 %v1010_v43, %v1009_v38  ;;  %v1186_v33 = vadd.f32 %v1185_v58, %v1184_v5  ;;  %v1329_v43 = vpop.permute.xlu0 %1328 }
 0x12e   : > { %v1205_v50 = vadd.f32 %v1204_v52, %v1203_v49  ;;  %v606_v46 = vadd.f32 %v605_v51, %v604_v37  ;;  %v625_v31 = vadd.f32 %v624_v14, %v623_v27  ;;  %v800_v63 = vadd.f32 %v799_v15, %v798_v16  ;;  %v1317_v49 = vld [vmem:[%s3396_s5] sm:$0xff]  ;;  %v1318_v37 = vld [vmem:[%s3396_s5 + $0x8] sm:$0xff] }
 0x12f   : > { %v819_v9 = vadd.f32 %v818_v1, %v817_v17  ;;  %v993_v3 = vrot.slane %v992_v18, 1  ;;  %v1012_v4 = vrot.slane %v1011_v22, 1  ;;  %v1187_v42 = vrot.slane %v1186_v33, 1 }
 0x130   : > { %v1206_v11 = vrot.slane %v1205_v50, 1  ;;  %v820_v44 = vadd.f32 %v800_v63, %v606_v46  ;;  %vm1426_vm0 = vcmask 1040384  }
 0x131   : > { %v821_v8 = vadd.f32 %v819_v9, %v625_v31  ;;  %v994_v48 = vadd.f32 %v993_v3, %v992_v18  ;;  %v1013_v28 = vadd.f32 %v1012_v4, %v1011_v22  ;;  %v1188_v39 = vadd.f32 %v1187_v42, %v1186_v33  ;;  %v1392_v33 = vpop.permute.xlu1 %1391 }
 0x132   : > { %v1207_v0 = vadd.f32 %v1206_v11, %v1205_v50 }
 0x133   : > { %v1014_v41 = vadd.f32 %v994_v48, %v820_v44  ;;  %v1015_v32 = vadd.f32 %v1013_v28, %v821_v8 }
 0x135   : > { %v3334_v21 = vadd.f32 %v1188_v39, %v1014_v41  ;;  %v3336_v59 = vadd.f32 %v1207_v0, %v1015_v32 }
 0x164   : > { %v1268_v47 = vpop.f32.mrf.mxu0  ;;  %v1297_v62 = vpop.f32.mrf.mxu1 }
 0x165   : > { %v1269_v56 = vadd.f32 %v1268_v47, %v3538_v34  ;;  %v1298_v13 = vadd.f32 %v1297_v62, %v3538_v34 }
 0x167   : > { %v1309_v38 = vmax.f32 %v1269_v56, 0.0  ;;  %v1310_v5 = vmax.f32 %v1298_v13, 0.0 }
 0x16b   : > { %v1277_v60 = vpop.f32.mrf.mxu2  ;;  %v1306_v2 = vpop.f32.mrf.mxu3 }
 0x16c   : > { %v1271_v23 = vpop.f32.mrf.mxu0  ;;  %v1278_v53 = vadd.f32 %v1277_v60, %v3535_v54  ;;  %v1300_v25 = vpop.f32.mrf.mxu1  ;;  %v1307_v26 = vadd.f32 %v1306_v2, %v3535_v54  ;;  %v1420_v60 = vstv %s1419_s8  ;;  %s1821_s8 = scalar_lea.hbm %s3400_s9, 6 }
 0x16d   : > { %v1272_v19 = vadd.f32 %v1271_v23, %v3536_v30  ;;  %v1301_v12 = vadd.f32 %v1300_v25, %v3536_v30  ;;  %p1823_p1 = scmp.lt.s32.totalorder %s1821_s8, %s1817_s29 }
 0x16e   : > { %v1315_v24 = vmax.f32 %v1278_v53, 0.0  ;;  %v1316_v7 = vmax.f32 %v1307_v26, 0.0  ;;  %v3539_v26 = vlaneseq }
 0x16f   : > { %v1311_v45 = vmax.f32 %v1272_v19, 0.0  ;;  %v1312_v36 = vmax.f32 %v1301_v12, 0.0  ;;  %p1824_p2 = por %p1823_p1, %p1822_p0 }
 0x170   : > { %1349 = vmatpush.msrb.mxu2 %v1315_v24  ;;  %1372 = vmatpush.msrb.mxu3 %v1316_v7  ;;  %vm1431_vm2 = vcmp.lt.s32.totalorder %v3539_v26, 256 }
 0x171   : > { %p1825_p3 = pnand %p1824_p2, %p1820_p13 }
 0x174   : > { %v1274_v40 = vpop.f32.mrf.mxu0  ;;  %v1303_v6 = vpop.f32.mrf.mxu1 }
 0x175   : > { %v1275_v29 = vadd.f32 %v1274_v40, %v3537_v20  ;;  %v1304_v55 = vadd.f32 %v1303_v6, %v3537_v20 }
 0x177   : > { %v1313_v57 = vmax.f32 %v1275_v29, 0.0  ;;  %v1314_v35 = vmax.f32 %v1304_v55, 0.0 }
 0x179   : > { %1350 = vmatpush.msrb.mxu2 %v1313_v57  ;;  %1373 = vmatpush.msrb.mxu3 %v1314_v35  ;;  %v1324_v17 = vpop.permute.xlu2 %1323 }
 0x17b   : > { %1351 = vmatpush.msrb.mxu2 %v1311_v45  ;;  %1374 = vmatpush.msrb.mxu3 %v1312_v36 }
 0x17d   : > { %1352 = vmatpush.msrb.mxu2 %v1309_v38  ;;  %1375 = vmatpush.msrb.mxu3 %v1310_v5 }
 0x17e   : > { %1740 = vmatmul.msk.f32.vlgmr.msrb.gmra.mxu2 %vm1238_vm6, %v1317_v49  ;;  %1742 = vmatmul.msk.f32.vlgmr.msrb.gmra.mxu3 %vm1238_vm6, %v1317_v49 }
 0x181   : > { %v1397_v50 = vpop.permute.xlu2 %1396 }
 0x186   : > { %1741 = vmatmul.msk.f32.gmra.mxu2 %vm1238_vm6, %v1318_v37  ;;  %1743 = vmatmul.msk.f32.gmra.mxu3 %vm1238_vm6, %v1318_v37 }
 0x201   : > { %v1354_v27 = vpop.f32.mrf.mxu2  ;;  %v1377_v16 = vpop.f32.mrf.mxu3 }
 0x202   : > { %v1355_v10 = vadd.f32 %v1354_v27, %v1324_v17  ;;  %v1378_v61 = vadd.f32 %v1377_v16, %v1324_v17 }
 0x204   : > { %v1383_v51 = vmax.f32 %v1355_v10, 0.0  ;;  %v1384_v14 = vmax.f32 %v1378_v61, 0.0 }
 0x206   : > { %v1399_v46 = vmul.f32 %v1392_v33, %v1383_v51  ;;  %v1400_v31 = vmul.f32 %v1392_v33, %v1384_v14 }
 0x209   : > { %v1357_v58 = vpop.f32.mrf.mxu2  ;;  %v1380_v52 = vpop.f32.mrf.mxu3 }
 0x20a   : > { %v1358_v15 = vadd.f32 %v1357_v58, %v1329_v43  ;;  %v1381_v1 = vadd.f32 %v1380_v52, %v1329_v43 }
 0x20c   : > { %v1385_v18 = vmax.f32 %v1358_v15, 0.0  ;;  %v1386_v22 = vmax.f32 %v1381_v1, 0.0 }
 0x20e   : > { %v1401_v63 = vmul.f32 %v1397_v50, %v1385_v18  ;;  %v1402_v9 = vmul.f32 %v1397_v50, %v1386_v22 }
 0x210   : > { %v1403_v47 = vadd.f32 %v1401_v63, %v1399_v46  ;;  %v1410_v62 = vadd.f32 %v1402_v9, %v1400_v31 }
 0x212   : > { %v1404_v3 = vrot.slane %v1403_v47, 4  ;;  %v1411_v4 = vrot.slane %v1410_v62, 4 }
 0x214   : > { %v1405_v42 = vadd.f32 %v1404_v3, %v1403_v47  ;;  %v1412_v11 = vadd.f32 %v1411_v4, %v1410_v62 }
 0x216   : > { %v1406_v44 = vrot.slane %v1405_v42, 2  ;;  %v1413_v8 = vrot.slane %v1412_v11, 2 }
 0x218   : > { %v1407_v48 = vadd.f32 %v1406_v44, %v1405_v42  ;;  %v1414_v28 = vadd.f32 %v1413_v8, %v1412_v11 }
 0x21a   : > { %v1408_v39 = vrot.slane %v1407_v48, 1  ;;  %v1415_v0 = vrot.slane %v1414_v28, 1 }
 0x21c   : > { %v1409_v41 = vadd.f32 %v1408_v39, %v1407_v48  ;;  %v1416_v32 = vadd.f32 %v1415_v0, %v1414_v28 }
 0x21e   : > { %v1417_v2 = vadd.f32 %v1409_v41, %v3334_v21  ;;  %v1418_v23 = vadd.f32 %v1416_v32, %v3336_v59 }
 0x220   : > { %v1422_v54 = vadd.f32 %v1420_v60, %v1418_v23  ;;  %v1421_v53 = vadd.f32 %v1420_v60, %v1417_v2 }
 0x222   : > { %v1425_v25 = vrot.slane %v1422_v54, 7 }
 0x224   : > { %v1427_v24 = vsel %vm1426_vm0, %v1421_v53, %v1425_v25 }
 0x225   : > { %1433 = vst.msk [vmem:[%s327_s25] sm:$0x3] %vm1431_vm2, %v1427_v24 }
 0x226   : > { %1828 = shalt.err (!%p1825_p3)
}
 0x227   : > { %1756 = dma.vmem_to_hbm [thread:$0]  (%p1956_p5), %s1448_s26, 32, %s1450_s27, %s1435_s28  }
 0x228 PF: > { %p1762_p4 = scmp.ge.s32.totalorder %s1863_s14, 2  ;;  %s1461_s15 = sand.u32 1, %s1851_s11  }
 0x229   : > { %s1462_s23 = scalar_lea.sflag [#allocation4], %s1461_s15 }
 0x22a   : > { %p1759_p7 = pnand %p1762_p4, %p1960_p6 }
 0x22c   : > { %p1760_p8 = pneg %p1759_p7 }
 0x22e   : > { %1846 = dma.done.wait (%p1760_p8), %s1462_s23, 32  }
 0x22f   : > { %1848 = vsyncadd (%p1760_p8), %s1462_s23, 4294967264  ;;  %p20_p9 = scmp.ge.s32.totalorder %s1944_s16, 5   ;;  %s3540_s11 = smov %s1855_s12 }
 0x230   : > { %s3541_s12 = smov %s1859_s13  ;;  %s3542_s13 = smov %s1954_s19 }
 0x231   : > { %s3543_s14 = smov %s1944_s16  ;;  %22 = sbr.rel (!%p20_p9) target bundleno = 5 (0x5), region = 91 }
 0x236   :  { %1468 = vsyncpa [#allocation4], 1 }
 0x237   :  { %1470 = vsyncpa [#allocation4 + $0x1], 1 }

</bundles_post_ra>
